<compile_context>
chip_gen: v7x
topology: tpu7x:2x2x1
jax: 0.10.0
libtpu: 0.0.40
codegen_flags: <defaults>
</compile_context>

<pallas_src>
import jax
import jax.numpy as jnp
from jax.experimental import pallas as pl
from jax.experimental.pallas import tpu as pltpu

# ---------------- model config (mirrors charRNN.__init__) ----------------
VOCAB_SIZE = 32          # len(vocabulary); embedding dim == vocab_size in charRNN
HIDDEN = 32              # config['hidden_nodes']
NUM_LAYERS = 2           # config['num_layers']
PAD_IDX = 0              # config['pad']
# config['dropout'] = 0.0 (inference -> inter-layer dropout is a no-op)
BATCH = 8                # 8 real sequences = one full sublane group (per perf review)
SEQ = 8
# TODO(synk): config['rnn'] == 'GRU' branch is not implemented; this kernel covers the LSTM path.


def charrnn_kernel(tok_ref, mask_ref,
                   ew0_ref, b0_ref, whh0_ref,
                   wih1_ref, whh1_ref, b1_ref,
                   wlinbd_ref, blint_ref,
                   logits_ref, hn_ref, cn_ref):
    """tok_ref: (T*Bp, 1) int32 time-major flattened token ids.
    mask_ref: (Bp, T) validity (1.0/0.0).
    ew0_ref: (V, 4H) = embedding @ W_ih0 (embedding folded into layer-0 input projection).
    b0_ref/b1_ref: (1, 4H). whh0/wih1/whh1: (H or H, 4H).
    wlinbd_ref: (T*H, T*V) block-diagonal final Linear. blint_ref: (1, T*V).
    Outputs: logits (Bp, T*V) lane-dense, hn/cn (L, Bp, H)."""
    Bp, T = mask_ref.shape
    H = hn_ref.shape[2]
    V = ew0_ref.shape[0]

    # tiny weights: load once, stay resident in vregs
    whh0 = whh0_ref[...]
    wih1 = wih1_ref[...]
    whh1 = whh1_ref[...]
    b1 = b1_ref[...]

    # ---- embedding + layer-0 input projection, hoisted out of the recurrence ----
    # one-hot(tokens) @ (E @ W_ih0): a single (T*Bp, V) @ (V, 4H) MXU pass, off the h1 chain.
    ids = tok_ref[...]                                                  # (T*Bp, 1) int32
    col = jax.lax.broadcasted_iota(jnp.int32, (T * Bp, V), 1)
    onehot = (ids == col).astype(jnp.float32)                           # (T*Bp, V)
    x0_all = jnp.dot(onehot, ew0_ref[...],
                     preferred_element_type=jnp.float32) + b0_ref[...]  # (T*Bp, 4H)

    valid = mask_ref[...] > 0.5                                         # (Bp, T) bool

    h1 = jnp.zeros((Bp, H), jnp.float32)
    c1 = jnp.zeros((Bp, H), jnp.float32)
    h2 = jnp.zeros((Bp, H), jnp.float32)
    c2 = jnp.zeros((Bp, H), jnp.float32)

    def gates_to_state(gates, c):
        # sigmoid full-width over the 4H = 128-lane row; tanh only on the g slice
        sig = jax.nn.sigmoid(gates)
        g = jnp.tanh(gates[:, 2 * H:3 * H])
        i = sig[:, 0:H]
        f = sig[:, H:2 * H]
        o = sig[:, 3 * H:4 * H]
        c_new = f * c + i * g
        h_new = o * jnp.tanh(c_new)
        return h_new, c_new

    outs = []
    for t in range(T):                                   # fully unrolled static time loop
        # one mask broadcast per step, reused by every select below (no CSE in JAX)
        m_b = jnp.broadcast_to(valid[:, t:t + 1], (Bp, H))

        # ---- layer 0: recurrent part only (input projection was hoisted) ----
        gates0 = x0_all[t * Bp:(t + 1) * Bp, :] + jnp.dot(
            h1, whh0, preferred_element_type=jnp.float32)
        h1_new, c1_new = gates_to_state(gates0, c1)
        x1_t = jnp.where(m_b, h1_new, 0.0)               # layer-1 input = masked layer-0 output
        h1 = jnp.where(m_b, h1_new, h1)
        c1 = jnp.where(m_b, c1_new, c1)

        # ---- layer 1: two split dots (no lane concat on the critical chain) ----
        gates1 = (jnp.dot(x1_t, wih1, preferred_element_type=jnp.float32)
                  + jnp.dot(h2, whh1, preferred_element_type=jnp.float32) + b1)
        h2_new, c2_new = gates_to_state(gates1, c2)
        h2 = jnp.where(m_b, h2_new, h2)
        c2 = jnp.where(m_b, c2_new, c2)

        # pad_packed_sequence zero-pads outputs; keep masked h2 as an SSA value (no store)
        outs.append(jnp.where(m_b, h2_new, 0.0))

    # ---- batched final Linear: one well-shaped dot + one lane-dense (8, 256) store ----
    hs = jnp.concatenate(outs, axis=1)                                   # (Bp, T*H)
    logits_ref[...] = jnp.dot(hs, wlinbd_ref[...],
                              preferred_element_type=jnp.float32) + blint_ref[...]

    hn_ref[0] = h1
    hn_ref[1] = h2
    cn_ref[0] = c1
    cn_ref[1] = c2


def prepare_kernel_params(p, seq_len):
    """One-time fusion/precompute of kernel weight matrices (NOT per forward call)."""
    T = seq_len
    hi = jax.lax.Precision.HIGHEST
    return {
        # embedding folded into the layer-0 input projection: (V, 4H)
        'ew0': jnp.dot(p['embedding'], p['wih0'], precision=hi),
        'b0': p['b0'],
        'whh0': p['whh0'],
        'wih1': p['wih1'],
        'whh1': p['whh1'],
        'b1': p['b1'],
        # block-diagonal final Linear for the batched (Bp, T*H) @ (T*H, T*V) dot
        'wlin_bd': jnp.kron(jnp.eye(T, dtype=jnp.float32), p['wlin']),   # (T*H, T*V)
        'blin_t': jnp.tile(p['blin'], (1, T)),                            # (1, T*V)
    }


@jax.jit
def charrnn_forward(tokens, lengths, kp):
    """tokens: (B,T) int32, lengths: (B,) int32 (sorted descending, as required by
    pack_padded_sequence). Returns (logits (B,T,V), lengths, (h_n, c_n))."""
    B0, T = tokens.shape
    H = kp['whh0'].shape[0]
    V = kp['ew0'].shape[0]

    # pad batch up to a full sublane group (8); padded rows get length 0 (fully masked)
    Bp = ((B0 + 7) // 8) * 8
    tokens_p = jnp.pad(tokens, ((0, Bp - B0), (0, 0)), constant_values=PAD_IDX)
    lengths_p = jnp.pad(lengths, (0, Bp - B0))

    tok_tm = tokens_p.T.reshape(T * Bp, 1).astype(jnp.int32)            # time-major flatten
    mask = (jnp.arange(T)[None, :] < lengths_p[:, None]).astype(jnp.float32)   # (Bp, T)

    vmem = pl.BlockSpec(memory_space=pltpu.MemorySpace.VMEM)
    out_shapes = (
        jax.ShapeDtypeStruct((Bp, T * V), jnp.float32),                 # logits, lane-dense
        jax.ShapeDtypeStruct((NUM_LAYERS, Bp, H), jnp.float32),         # h_n
        jax.ShapeDtypeStruct((NUM_LAYERS, Bp, H), jnp.float32),         # c_n
    )
    logits_flat, h_n, c_n = pl.pallas_call(
        charrnn_kernel,
        out_shape=out_shapes,
        in_specs=[vmem] * 10,
        out_specs=(vmem, vmem, vmem),
    )(tok_tm, mask, kp['ew0'], kp['b0'], kp['whh0'],
      kp['wih1'], kp['whh1'], kp['b1'], kp['wlin_bd'], kp['blin_t'])

    logits = logits_flat.reshape(Bp, T, V)[:B0]
    return logits, lengths, (h_n[:, :B0], c_n[:, :B0])


def reference_forward(tokens, lengths, p):
    """Pure-JAX reference with identical math (uses the UN-fused weights)."""
    x = jnp.take(p['embedding'], tokens, axis=0)
    B, T, _ = x.shape
    H = p['whh0'].shape[0]
    mask = (jnp.arange(T)[None, :] < lengths[:, None]).astype(jnp.float32)
    layer_in = x
    hs, cs = [], []
    for (wih, whh, b) in [(p['wih0'], p['whh0'], p['b0']),
                          (p['wih1'], p['whh1'], p['b1'])]:
        h = jnp.zeros((B, H), jnp.float32)
        c = jnp.zeros((B, H), jnp.float32)
        outs = []
        for t in range(T):
            x_t = layer_in[:, t, :]
            m_t = mask[:, t][:, None]
            gates = x_t @ wih + h @ whh + b
            i = jax.nn.sigmoid(gates[:, :H])
            f = jax.nn.sigmoid(gates[:, H:2 * H])
            g = jnp.tanh(gates[:, 2 * H:3 * H])
            o = jax.nn.sigmoid(gates[:, 3 * H:])
            c_new = f * c + i * g
            h_new = o * jnp.tanh(c_new)
            c = m_t * c_new + (1.0 - m_t) * c
            h = m_t * h_new + (1.0 - m_t) * h
            outs.append(h_new * m_t)
        layer_in = jnp.stack(outs, axis=1)
        hs.append(h)
        cs.append(c)
    logits = layer_in @ p['wlin'] + p['blin'][0]
    return logits, lengths, (jnp.stack(hs), jnp.stack(cs))


def make_params(key):
    V, H = VOCAB_SIZE, HIDDEN
    ks = jax.random.split(key, 10)
    s = 0.1
    emb = s * jax.random.normal(ks[0], (V, V), jnp.float32)
    emb = emb.at[PAD_IDX].set(0.0)                          # padding_idx row = 0
    params = {
        'embedding': emb,
        # layer 0: input size = vocab_size (embedding dim)
        'wih0': s * jax.random.normal(ks[1], (V, 4 * H), jnp.float32),
        'whh0': s * jax.random.normal(ks[2], (H, 4 * H), jnp.float32),
        'b0':   s * jax.random.normal(ks[3], (1, 4 * H), jnp.float32),  # b_ih + b_hh combined
        # layer 1: input size = hidden
        'wih1': s * jax.random.normal(ks[4], (H, 4 * H), jnp.float32),
        'whh1': s * jax.random.normal(ks[5], (H, 4 * H), jnp.float32),
        'b1':   s * jax.random.normal(ks[6], (1, 4 * H), jnp.float32),
        # final linear: Linear(hidden_size, vocab_size), stored transposed (H, V)
        'wlin': s * jax.random.normal(ks[7], (H, V), jnp.float32),
        'blin': s * jax.random.normal(ks[8], (1, V), jnp.float32),
    }
    return params


if __name__ == "__main__":
    key = jax.random.PRNGKey(0)
    pkey, tkey = jax.random.split(key)
    params = make_params(pkey)
    kparams = prepare_kernel_params(params, SEQ)            # fused weights built ONCE

    # 8 real sequences fill every sublane row; lengths sorted descending
    lengths = jnp.array([8, 8, 7, 6, 5, 4, 3, 2], dtype=jnp.int32)
    tokens = jax.random.randint(tkey, (BATCH, SEQ), 1, VOCAB_SIZE, dtype=jnp.int32)
    pad_mask = jnp.arange(SEQ)[None, :] < lengths[:, None]
    tokens = jnp.where(pad_mask, tokens, PAD_IDX)

    logits, out_lengths, (h_n, c_n) = charrnn_forward(tokens, lengths, kparams)
    jax.block_until_ready((logits, h_n, c_n))

    # self-check against a pure-JAX reference (un-fused weights)
    r_logits, _, (r_hn, r_cn) = reference_forward(tokens, lengths, params)
    assert logits.shape == (BATCH, SEQ, VOCAB_SIZE)
    assert h_n.shape == (NUM_LAYERS, BATCH, HIDDEN)
    assert c_n.shape == (NUM_LAYERS, BATCH, HIDDEN)
    assert jnp.allclose(logits, r_logits, atol=2e-4)
    assert jnp.allclose(h_n, r_hn, atol=2e-4)
    assert jnp.allclose(c_n, r_cn, atol=2e-4)

    # TODO(synk): dropout between LSTM layers is training-only in PyTorch; forward here is inference (no-op).
    print("KERNEL_OK")
</pallas_src>

<mosaic_0001>
module attributes {stable_mosaic.version = 11 : i64} {
  func.func @charrnn_kernel(%arg0: memref<64x1xi32, #tpu.memory_space<vmem>>, %arg1: memref<8x8xf32, #tpu.memory_space<vmem>>, %arg2: memref<32x128xf32, #tpu.memory_space<vmem>>, %arg3: memref<1x128xf32, #tpu.memory_space<vmem>>, %arg4: memref<32x128xf32, #tpu.memory_space<vmem>>, %arg5: memref<32x128xf32, #tpu.memory_space<vmem>>, %arg6: memref<32x128xf32, #tpu.memory_space<vmem>>, %arg7: memref<1x128xf32, #tpu.memory_space<vmem>>, %arg8: memref<256x256xf32, #tpu.memory_space<vmem>>, %arg9: memref<1x256xf32, #tpu.memory_space<vmem>>, %arg10: memref<8x256xf32, #tpu.memory_space<vmem>>, %arg11: memref<2x8x32xf32, #tpu.memory_space<vmem>>, %arg12: memref<2x8x32xf32, #tpu.memory_space<vmem>>) attributes {dimension_semantics = [], scalar_prefetch = 0 : i64, scratch_operands = 0 : i64, tpu.core_type = #tpu.core_type<tc>} {
    %c0 = arith.constant 0 : index
    %c0_0 = arith.constant 0 : index
    %0 = vector.load %arg4[%c0, %c0_0] : memref<32x128xf32, #tpu.memory_space<vmem>>, vector<32x128xf32>
    %c0_1 = arith.constant 0 : index
    %c0_2 = arith.constant 0 : index
    %1 = vector.load %arg5[%c0_1, %c0_2] : memref<32x128xf32, #tpu.memory_space<vmem>>, vector<32x128xf32>
    %c0_3 = arith.constant 0 : index
    %c0_4 = arith.constant 0 : index
    %2 = vector.load %arg6[%c0_3, %c0_4] : memref<32x128xf32, #tpu.memory_space<vmem>>, vector<32x128xf32>
    %c0_5 = arith.constant 0 : index
    %c0_6 = arith.constant 0 : index
    %3 = vector.load %arg7[%c0_5, %c0_6] : memref<1x128xf32, #tpu.memory_space<vmem>>, vector<1x128xf32>
    %c0_7 = arith.constant 0 : index
    %c0_8 = arith.constant 0 : index
    %4 = vector.load %arg0[%c0_7, %c0_8] : memref<64x1xi32, #tpu.memory_space<vmem>>, vector<64x1xi32>
    %5 = tpu.iota {dimensions = array<i32: 1>} : vector<64x32xi32>
    %6 = vector.broadcast %4 : vector<64x1xi32> to vector<64x32xi32>
    %7 = arith.cmpi eq, %6, %5 : vector<64x32xi32>
    %8 = arith.extui %7 : vector<64x32xi1> to vector<64x32xi32>
    %9 = arith.sitofp %8 : vector<64x32xi32> to vector<64x32xf32>
    %c0_9 = arith.constant 0 : index
    %c0_10 = arith.constant 0 : index
    %10 = vector.load %arg2[%c0_9, %c0_10] : memref<32x128xf32, #tpu.memory_space<vmem>>, vector<32x128xf32>
    %cst = arith.constant dense<0.000000e+00> : vector<64x128xf32>
    %11 = tpu.matmul %9, %10, %cst {dimension_numbers = #tpu.dot_dimension_numbers<[1], [0], [0], [1], [0, 0, 1, 1], [], []>} : vector<64x32xf32>, vector<32x128xf32>, vector<64x128xf32> -> vector<64x128xf32>
    %c0_11 = arith.constant 0 : index
    %c0_12 = arith.constant 0 : index
    %12 = vector.load %arg3[%c0_11, %c0_12] : memref<1x128xf32, #tpu.memory_space<vmem>>, vector<1x128xf32>
    %13 = vector.broadcast %12 : vector<1x128xf32> to vector<64x128xf32>
    %14 = arith.addf %11, %13 : vector<64x128xf32>
    %c0_13 = arith.constant 0 : index
    %c0_14 = arith.constant 0 : index
    %15 = vector.load %arg1[%c0_13, %c0_14] : memref<8x8xf32, #tpu.memory_space<vmem>>, vector<8x8xf32>
    %cst_15 = arith.constant 5.000000e-01 : f32
    %16 = vector.broadcast %cst_15 : f32 to vector<8x8xf32>
    %17 = arith.cmpf ogt, %15, %16 : vector<8x8xf32>
    %cst_16 = arith.constant 0.000000e+00 : f32
    %18 = vector.broadcast %cst_16 : f32 to vector<8x32xf32>
    %cst_17 = arith.constant 0.000000e+00 : f32
    %19 = vector.broadcast %cst_17 : f32 to vector<8x32xf32>
    %cst_18 = arith.constant 0.000000e+00 : f32
    %20 = vector.broadcast %cst_18 : f32 to vector<8x32xf32>
    %cst_19 = arith.constant 0.000000e+00 : f32
    %21 = vector.broadcast %cst_19 : f32 to vector<8x32xf32>
    %22 = vector.extract_strided_slice %17 {offsets = [0, 0], sizes = [8, 1], strides = [1, 1]} : vector<8x8xi1> to vector<8x1xi1>
    %23 = vector.shape_cast %22 : vector<8x1xi1> to vector<8x1xi1>
    %24 = vector.broadcast %23 : vector<8x1xi1> to vector<8x32xi1>
    %25 = vector.extract_strided_slice %14 {offsets = [0, 0], sizes = [8, 128], strides = [1, 1]} : vector<64x128xf32> to vector<8x128xf32>
    %cst_20 = arith.constant dense<0.000000e+00> : vector<8x128xf32>
    %26 = tpu.matmul %18, %0, %cst_20 {dimension_numbers = #tpu.dot_dimension_numbers<[1], [0], [0], [1], [0, 0, 1, 1], [], []>} : vector<8x32xf32>, vector<32x128xf32>, vector<8x128xf32> -> vector<8x128xf32>
    %27 = arith.addf %25, %26 : vector<8x128xf32>
    %28 = arith.negf %27 : vector<8x128xf32>
    %29 = math.exp %28 : vector<8x128xf32>
    %cst_21 = arith.constant 1.000000e+00 : f32
    %30 = vector.broadcast %cst_21 : f32 to vector<8x128xf32>
    %31 = arith.addf %30, %29 : vector<8x128xf32>
    %32 = arith.divf %30, %31 : vector<8x128xf32>
    %33 = vector.extract_strided_slice %27 {offsets = [0, 64], sizes = [8, 32], strides = [1, 1]} : vector<8x128xf32> to vector<8x32xf32>
    %34 = math.tanh %33 : vector<8x32xf32>
    %35 = vector.extract_strided_slice %32 {offsets = [0, 0], sizes = [8, 32], strides = [1, 1]} : vector<8x128xf32> to vector<8x32xf32>
    %36 = vector.extract_strided_slice %32 {offsets = [0, 32], sizes = [8, 32], strides = [1, 1]} : vector<8x128xf32> to vector<8x32xf32>
    %37 = vector.extract_strided_slice %32 {offsets = [0, 96], sizes = [8, 32], strides = [1, 1]} : vector<8x128xf32> to vector<8x32xf32>
    %38 = arith.mulf %36, %19 : vector<8x32xf32>
    %39 = arith.mulf %35, %34 : vector<8x32xf32>
    %40 = arith.addf %38, %39 : vector<8x32xf32>
    %41 = math.tanh %40 : vector<8x32xf32>
    %42 = arith.mulf %37, %41 : vector<8x32xf32>
    %cst_22 = arith.constant 0.000000e+00 : f32
    %43 = vector.broadcast %cst_22 : f32 to vector<8x32xf32>
    %44 = arith.select %24, %42, %43 : vector<8x32xi1>, vector<8x32xf32>
    %45 = arith.select %24, %42, %18 : vector<8x32xi1>, vector<8x32xf32>
    %46 = arith.select %24, %40, %19 : vector<8x32xi1>, vector<8x32xf32>
    %cst_23 = arith.constant dense<0.000000e+00> : vector<8x128xf32>
    %47 = tpu.matmul %44, %1, %cst_23 {dimension_numbers = #tpu.dot_dimension_numbers<[1], [0], [0], [1], [0, 0, 1, 1], [], []>} : vector<8x32xf32>, vector<32x128xf32>, vector<8x128xf32> -> vector<8x128xf32>
    %cst_24 = arith.constant dense<0.000000e+00> : vector<8x128xf32>
    %48 = tpu.matmul %20, %2, %cst_24 {dimension_numbers = #tpu.dot_dimension_numbers<[1], [0], [0], [1], [0, 0, 1, 1], [], []>} : vector<8x32xf32>, vector<32x128xf32>, vector<8x128xf32> -> vector<8x128xf32>
    %49 = arith.addf %47, %48 : vector<8x128xf32>
    %50 = vector.broadcast %3 : vector<1x128xf32> to vector<8x128xf32>
    %51 = arith.addf %49, %50 : vector<8x128xf32>
    %52 = arith.negf %51 : vector<8x128xf32>
    %53 = math.exp %52 : vector<8x128xf32>
    %cst_25 = arith.constant 1.000000e+00 : f32
    %54 = vector.broadcast %cst_25 : f32 to vector<8x128xf32>
    %55 = arith.addf %54, %53 : vector<8x128xf32>
    %56 = arith.divf %54, %55 : vector<8x128xf32>
    %57 = vector.extract_strided_slice %51 {offsets = [0, 64], sizes = [8, 32], strides = [1, 1]} : vector<8x128xf32> to vector<8x32xf32>
    %58 = math.tanh %57 : vector<8x32xf32>
    %59 = vector.extract_strided_slice %56 {offsets = [0, 0], sizes = [8, 32], strides = [1, 1]} : vector<8x128xf32> to vector<8x32xf32>
    %60 = vector.extract_strided_slice %56 {offsets = [0, 32], sizes = [8, 32], strides = [1, 1]} : vector<8x128xf32> to vector<8x32xf32>
    %61 = vector.extract_strided_slice %56 {offsets = [0, 96], sizes = [8, 32], strides = [1, 1]} : vector<8x128xf32> to vector<8x32xf32>
    %62 = arith.mulf %60, %21 : vector<8x32xf32>
    %63 = arith.mulf %59, %58 : vector<8x32xf32>
    %64 = arith.addf %62, %63 : vector<8x32xf32>
    %65 = math.tanh %64 : vector<8x32xf32>
    %66 = arith.mulf %61, %65 : vector<8x32xf32>
    %67 = arith.select %24, %66, %20 : vector<8x32xi1>, vector<8x32xf32>
    %68 = arith.select %24, %64, %21 : vector<8x32xi1>, vector<8x32xf32>
    %cst_26 = arith.constant 0.000000e+00 : f32
    %69 = vector.broadcast %cst_26 : f32 to vector<8x32xf32>
    %70 = arith.select %24, %66, %69 : vector<8x32xi1>, vector<8x32xf32>
    %71 = vector.extract_strided_slice %17 {offsets = [0, 1], sizes = [8, 1], strides = [1, 1]} : vector<8x8xi1> to vector<8x1xi1>
    %72 = vector.shape_cast %71 : vector<8x1xi1> to vector<8x1xi1>
    %73 = vector.broadcast %72 : vector<8x1xi1> to vector<8x32xi1>
    %74 = vector.extract_strided_slice %14 {offsets = [8, 0], sizes = [8, 128], strides = [1, 1]} : vector<64x128xf32> to vector<8x128xf32>
    %cst_27 = arith.constant dense<0.000000e+00> : vector<8x128xf32>
    %75 = tpu.matmul %45, %0, %cst_27 {dimension_numbers = #tpu.dot_dimension_numbers<[1], [0], [0], [1], [0, 0, 1, 1], [], []>} : vector<8x32xf32>, vector<32x128xf32>, vector<8x128xf32> -> vector<8x128xf32>
    %76 = arith.addf %74, %75 : vector<8x128xf32>
    %77 = arith.negf %76 : vector<8x128xf32>
    %78 = math.exp %77 : vector<8x128xf32>
    %cst_28 = arith.constant 1.000000e+00 : f32
    %79 = vector.broadcast %cst_28 : f32 to vector<8x128xf32>
    %80 = arith.addf %79, %78 : vector<8x128xf32>
    %81 = arith.divf %79, %80 : vector<8x128xf32>
    %82 = vector.extract_strided_slice %76 {offsets = [0, 64], sizes = [8, 32], strides = [1, 1]} : vector<8x128xf32> to vector<8x32xf32>
    %83 = math.tanh %82 : vector<8x32xf32>
    %84 = vector.extract_strided_slice %81 {offsets = [0, 0], sizes = [8, 32], strides = [1, 1]} : vector<8x128xf32> to vector<8x32xf32>
    %85 = vector.extract_strided_slice %81 {offsets = [0, 32], sizes = [8, 32], strides = [1, 1]} : vector<8x128xf32> to vector<8x32xf32>
    %86 = vector.extract_strided_slice %81 {offsets = [0, 96], sizes = [8, 32], strides = [1, 1]} : vector<8x128xf32> to vector<8x32xf32>
    %87 = arith.mulf %85, %46 : vector<8x32xf32>
    %88 = arith.mulf %84, %83 : vector<8x32xf32>
    %89 = arith.addf %87, %88 : vector<8x32xf32>
    %90 = math.tanh %89 : vector<8x32xf32>
    %91 = arith.mulf %86, %90 : vector<8x32xf32>
    %cst_29 = arith.constant 0.000000e+00 : f32
    %92 = vector.broadcast %cst_29 : f32 to vector<8x32xf32>
    %93 = arith.select %73, %91, %92 : vector<8x32xi1>, vector<8x32xf32>
    %94 = arith.select %73, %91, %45 : vector<8x32xi1>, vector<8x32xf32>
    %95 = arith.select %73, %89, %46 : vector<8x32xi1>, vector<8x32xf32>
    %cst_30 = arith.constant dense<0.000000e+00> : vector<8x128xf32>
    %96 = tpu.matmul %93, %1, %cst_30 {dimension_numbers = #tpu.dot_dimension_numbers<[1], [0], [0], [1], [0, 0, 1, 1], [], []>} : vector<8x32xf32>, vector<32x128xf32>, vector<8x128xf32> -> vector<8x128xf32>
    %cst_31 = arith.constant dense<0.000000e+00> : vector<8x128xf32>
    %97 = tpu.matmul %67, %2, %cst_31 {dimension_numbers = #tpu.dot_dimension_numbers<[1], [0], [0], [1], [0, 0, 1, 1], [], []>} : vector<8x32xf32>, vector<32x128xf32>, vector<8x128xf32> -> vector<8x128xf32>
    %98 = arith.addf %96, %97 : vector<8x128xf32>
    %99 = vector.broadcast %3 : vector<1x128xf32> to vector<8x128xf32>
    %100 = arith.addf %98, %99 : vector<8x128xf32>
    %101 = arith.negf %100 : vector<8x128xf32>
    %102 = math.exp %101 : vector<8x128xf32>
    %cst_32 = arith.constant 1.000000e+00 : f32
    %103 = vector.broadcast %cst_32 : f32 to vector<8x128xf32>
    %104 = arith.addf %103, %102 : vector<8x128xf32>
    %105 = arith.divf %103, %104 : vector<8x128xf32>
    %106 = vector.extract_strided_slice %100 {offsets = [0, 64], sizes = [8, 32], strides = [1, 1]} : vector<8x128xf32> to vector<8x32xf32>
    %107 = math.tanh %106 : vector<8x32xf32>
    %108 = vector.extract_strided_slice %105 {offsets = [0, 0], sizes = [8, 32], strides = [1, 1]} : vector<8x128xf32> to vector<8x32xf32>
    %109 = vector.extract_strided_slice %105 {offsets = [0, 32], sizes = [8, 32], strides = [1, 1]} : vector<8x128xf32> to vector<8x32xf32>
    %110 = vector.extract_strided_slice %105 {offsets = [0, 96], sizes = [8, 32], strides = [1, 1]} : vector<8x128xf32> to vector<8x32xf32>
    %111 = arith.mulf %109, %68 : vector<8x32xf32>
    %112 = arith.mulf %108, %107 : vector<8x32xf32>
    %113 = arith.addf %111, %112 : vector<8x32xf32>
    %114 = math.tanh %113 : vector<8x32xf32>
    %115 = arith.mulf %110, %114 : vector<8x32xf32>
    %116 = arith.select %73, %115, %67 : vector<8x32xi1>, vector<8x32xf32>
    %117 = arith.select %73, %113, %68 : vector<8x32xi1>, vector<8x32xf32>
    %cst_33 = arith.constant 0.000000e+00 : f32
    %118 = vector.broadcast %cst_33 : f32 to vector<8x32xf32>
    %119 = arith.select %73, %115, %118 : vector<8x32xi1>, vector<8x32xf32>
    %120 = vector.extract_strided_slice %17 {offsets = [0, 2], sizes = [8, 1], strides = [1, 1]} : vector<8x8xi1> to vector<8x1xi1>
    %121 = vector.shape_cast %120 : vector<8x1xi1> to vector<8x1xi1>
    %122 = vector.broadcast %121 : vector<8x1xi1> to vector<8x32xi1>
    %123 = vector.extract_strided_slice %14 {offsets = [16, 0], sizes = [8, 128], strides = [1, 1]} : vector<64x128xf32> to vector<8x128xf32>
    %cst_34 = arith.constant dense<0.000000e+00> : vector<8x128xf32>
    %124 = tpu.matmul %94, %0, %cst_34 {dimension_numbers = #tpu.dot_dimension_numbers<[1], [0], [0], [1], [0, 0, 1, 1], [], []>} : vector<8x32xf32>, vector<32x128xf32>, vector<8x128xf32> -> vector<8x128xf32>
    %125 = arith.addf %123, %124 : vector<8x128xf32>
    %126 = arith.negf %125 : vector<8x128xf32>
    %127 = math.exp %126 : vector<8x128xf32>
    %cst_35 = arith.constant 1.000000e+00 : f32
    %128 = vector.broadcast %cst_35 : f32 to vector<8x128xf32>
    %129 = arith.addf %128, %127 : vector<8x128xf32>
    %130 = arith.divf %128, %129 : vector<8x128xf32>
    %131 = vector.extract_strided_slice %125 {offsets = [0, 64], sizes = [8, 32], strides = [1, 1]} : vector<8x128xf32> to vector<8x32xf32>
    %132 = math.tanh %131 : vector<8x32xf32>
    %133 = vector.extract_strided_slice %130 {offsets = [0, 0], sizes = [8, 32], strides = [1, 1]} : vector<8x128xf32> to vector<8x32xf32>
    %134 = vector.extract_strided_slice %130 {offsets = [0, 32], sizes = [8, 32], strides = [1, 1]} : vector<8x128xf32> to vector<8x32xf32>
    %135 = vector.extract_strided_slice %130 {offsets = [0, 96], sizes = [8, 32], strides = [1, 1]} : vector<8x128xf32> to vector<8x32xf32>
    %136 = arith.mulf %134, %95 : vector<8x32xf32>
    %137 = arith.mulf %133, %132 : vector<8x32xf32>
    %138 = arith.addf %136, %137 : vector<8x32xf32>
    %139 = math.tanh %138 : vector<8x32xf32>
    %140 = arith.mulf %135, %139 : vector<8x32xf32>
    %cst_36 = arith.constant 0.000000e+00 : f32
    %141 = vector.broadcast %cst_36 : f32 to vector<8x32xf32>
    %142 = arith.select %122, %140, %141 : vector<8x32xi1>, vector<8x32xf32>
    %143 = arith.select %122, %140, %94 : vector<8x32xi1>, vector<8x32xf32>
    %144 = arith.select %122, %138, %95 : vector<8x32xi1>, vector<8x32xf32>
    %cst_37 = arith.constant dense<0.000000e+00> : vector<8x128xf32>
    %145 = tpu.matmul %142, %1, %cst_37 {dimension_numbers = #tpu.dot_dimension_numbers<[1], [0], [0], [1], [0, 0, 1, 1], [], []>} : vector<8x32xf32>, vector<32x128xf32>, vector<8x128xf32> -> vector<8x128xf32>
    %cst_38 = arith.constant dense<0.000000e+00> : vector<8x128xf32>
    %146 = tpu.matmul %116, %2, %cst_38 {dimension_numbers = #tpu.dot_dimension_numbers<[1], [0], [0], [1], [0, 0, 1, 1], [], []>} : vector<8x32xf32>, vector<32x128xf32>, vector<8x128xf32> -> vector<8x128xf32>
    %147 = arith.addf %145, %146 : vector<8x128xf32>
    %148 = vector.broadcast %3 : vector<1x128xf32> to vector<8x128xf32>
    %149 = arith.addf %147, %148 : vector<8x128xf32>
    %150 = arith.negf %149 : vector<8x128xf32>
    %151 = math.exp %150 : vector<8x128xf32>
    %cst_39 = arith.constant 1.000000e+00 : f32
    %152 = vector.broadcast %cst_39 : f32 to vector<8x128xf32>
    %153 = arith.addf %152, %151 : vector<8x128xf32>
    %154 = arith.divf %152, %153 : vector<8x128xf32>
    %155 = vector.extract_strided_slice %149 {offsets = [0, 64], sizes = [8, 32], strides = [1, 1]} : vector<8x128xf32> to vector<8x32xf32>
    %156 = math.tanh %155 : vector<8x32xf32>
    %157 = vector.extract_strided_slice %154 {offsets = [0, 0], sizes = [8, 32], strides = [1, 1]} : vector<8x128xf32> to vector<8x32xf32>
    %158 = vector.extract_strided_slice %154 {offsets = [0, 32], sizes = [8, 32], strides = [1, 1]} : vector<8x128xf32> to vector<8x32xf32>
    %159 = vector.extract_strided_slice %154 {offsets = [0, 96], sizes = [8, 32], strides = [1, 1]} : vector<8x128xf32> to vector<8x32xf32>
    %160 = arith.mulf %158, %117 : vector<8x32xf32>
    %161 = arith.mulf %157, %156 : vector<8x32xf32>
    %162 = arith.addf %160, %161 : vector<8x32xf32>
    %163 = math.tanh %162 : vector<8x32xf32>
    %164 = arith.mulf %159, %163 : vector<8x32xf32>
    %165 = arith.select %122, %164, %116 : vector<8x32xi1>, vector<8x32xf32>
    %166 = arith.select %122, %162, %117 : vector<8x32xi1>, vector<8x32xf32>
    %cst_40 = arith.constant 0.000000e+00 : f32
    %167 = vector.broadcast %cst_40 : f32 to vector<8x32xf32>
    %168 = arith.select %122, %164, %167 : vector<8x32xi1>, vector<8x32xf32>
    %169 = vector.extract_strided_slice %17 {offsets = [0, 3], sizes = [8, 1], strides = [1, 1]} : vector<8x8xi1> to vector<8x1xi1>
    %170 = vector.shape_cast %169 : vector<8x1xi1> to vector<8x1xi1>
    %171 = vector.broadcast %170 : vector<8x1xi1> to vector<8x32xi1>
    %172 = vector.extract_strided_slice %14 {offsets = [24, 0], sizes = [8, 128], strides = [1, 1]} : vector<64x128xf32> to vector<8x128xf32>
    %cst_41 = arith.constant dense<0.000000e+00> : vector<8x128xf32>
    %173 = tpu.matmul %143, %0, %cst_41 {dimension_numbers = #tpu.dot_dimension_numbers<[1], [0], [0], [1], [0, 0, 1, 1], [], []>} : vector<8x32xf32>, vector<32x128xf32>, vector<8x128xf32> -> vector<8x128xf32>
    %174 = arith.addf %172, %173 : vector<8x128xf32>
    %175 = arith.negf %174 : vector<8x128xf32>
    %176 = math.exp %175 : vector<8x128xf32>
    %cst_42 = arith.constant 1.000000e+00 : f32
    %177 = vector.broadcast %cst_42 : f32 to vector<8x128xf32>
    %178 = arith.addf %177, %176 : vector<8x128xf32>
    %179 = arith.divf %177, %178 : vector<8x128xf32>
    %180 = vector.extract_strided_slice %174 {offsets = [0, 64], sizes = [8, 32], strides = [1, 1]} : vector<8x128xf32> to vector<8x32xf32>
    %181 = math.tanh %180 : vector<8x32xf32>
    %182 = vector.extract_strided_slice %179 {offsets = [0, 0], sizes = [8, 32], strides = [1, 1]} : vector<8x128xf32> to vector<8x32xf32>
    %183 = vector.extract_strided_slice %179 {offsets = [0, 32], sizes = [8, 32], strides = [1, 1]} : vector<8x128xf32> to vector<8x32xf32>
    %184 = vector.extract_strided_slice %179 {offsets = [0, 96], sizes = [8, 32], strides = [1, 1]} : vector<8x128xf32> to vector<8x32xf32>
    %185 = arith.mulf %183, %144 : vector<8x32xf32>
    %186 = arith.mulf %182, %181 : vector<8x32xf32>
    %187 = arith.addf %185, %186 : vector<8x32xf32>
    %188 = math.tanh %187 : vector<8x32xf32>
    %189 = arith.mulf %184, %188 : vector<8x32xf32>
    %cst_43 = arith.constant 0.000000e+00 : f32
    %190 = vector.broadcast %cst_43 : f32 to vector<8x32xf32>
    %191 = arith.select %171, %189, %190 : vector<8x32xi1>, vector<8x32xf32>
    %192 = arith.select %171, %189, %143 : vector<8x32xi1>, vector<8x32xf32>
    %193 = arith.select %171, %187, %144 : vector<8x32xi1>, vector<8x32xf32>
    %cst_44 = arith.constant dense<0.000000e+00> : vector<8x128xf32>
    %194 = tpu.matmul %191, %1, %cst_44 {dimension_numbers = #tpu.dot_dimension_numbers<[1], [0], [0], [1], [0, 0, 1, 1], [], []>} : vector<8x32xf32>, vector<32x128xf32>, vector<8x128xf32> -> vector<8x128xf32>
    %cst_45 = arith.constant dense<0.000000e+00> : vector<8x128xf32>
    %195 = tpu.matmul %165, %2, %cst_45 {dimension_numbers = #tpu.dot_dimension_numbers<[1], [0], [0], [1], [0, 0, 1, 1], [], []>} : vector<8x32xf32>, vector<32x128xf32>, vector<8x128xf32> -> vector<8x128xf32>
    %196 = arith.addf %194, %195 : vector<8x128xf32>
    %197 = vector.broadcast %3 : vector<1x128xf32> to vector<8x128xf32>
    %198 = arith.addf %196, %197 : vector<8x128xf32>
    %199 = arith.negf %198 : vector<8x128xf32>
    %200 = math.exp %199 : vector<8x128xf32>
    %cst_46 = arith.constant 1.000000e+00 : f32
    %201 = vector.broadcast %cst_46 : f32 to vector<8x128xf32>
    %202 = arith.addf %201, %200 : vector<8x128xf32>
    %203 = arith.divf %201, %202 : vector<8x128xf32>
    %204 = vector.extract_strided_slice %198 {offsets = [0, 64], sizes = [8, 32], strides = [1, 1]} : vector<8x128xf32> to vector<8x32xf32>
    %205 = math.tanh %204 : vector<8x32xf32>
    %206 = vector.extract_strided_slice %203 {offsets = [0, 0], sizes = [8, 32], strides = [1, 1]} : vector<8x128xf32> to vector<8x32xf32>
    %207 = vector.extract_strided_slice %203 {offsets = [0, 32], sizes = [8, 32], strides = [1, 1]} : vector<8x128xf32> to vector<8x32xf32>
    %208 = vector.extract_strided_slice %203 {offsets = [0, 96], sizes = [8, 32], strides = [1, 1]} : vector<8x128xf32> to vector<8x32xf32>
    %209 = arith.mulf %207, %166 : vector<8x32xf32>
    %210 = arith.mulf %206, %205 : vector<8x32xf32>
    %211 = arith.addf %209, %210 : vector<8x32xf32>
    %212 = math.tanh %211 : vector<8x32xf32>
    %213 = arith.mulf %208, %212 : vector<8x32xf32>
    %214 = arith.select %171, %213, %165 : vector<8x32xi1>, vector<8x32xf32>
    %215 = arith.select %171, %211, %166 : vector<8x32xi1>, vector<8x32xf32>
    %cst_47 = arith.constant 0.000000e+00 : f32
    %216 = vector.broadcast %cst_47 : f32 to vector<8x32xf32>
    %217 = arith.select %171, %213, %216 : vector<8x32xi1>, vector<8x32xf32>
    %218 = vector.extract_strided_slice %17 {offsets = [0, 4], sizes = [8, 1], strides = [1, 1]} : vector<8x8xi1> to vector<8x1xi1>
    %219 = vector.shape_cast %218 : vector<8x1xi1> to vector<8x1xi1>
    %220 = vector.broadcast %219 : vector<8x1xi1> to vector<8x32xi1>
    %221 = vector.extract_strided_slice %14 {offsets = [32, 0], sizes = [8, 128], strides = [1, 1]} : vector<64x128xf32> to vector<8x128xf32>
    %cst_48 = arith.constant dense<0.000000e+00> : vector<8x128xf32>
    %222 = tpu.matmul %192, %0, %cst_48 {dimension_numbers = #tpu.dot_dimension_numbers<[1], [0], [0], [1], [0, 0, 1, 1], [], []>} : vector<8x32xf32>, vector<32x128xf32>, vector<8x128xf32> -> vector<8x128xf32>
    %223 = arith.addf %221, %222 : vector<8x128xf32>
    %224 = arith.negf %223 : vector<8x128xf32>
    %225 = math.exp %224 : vector<8x128xf32>
    %cst_49 = arith.constant 1.000000e+00 : f32
    %226 = vector.broadcast %cst_49 : f32 to vector<8x128xf32>
    %227 = arith.addf %226, %225 : vector<8x128xf32>
    %228 = arith.divf %226, %227 : vector<8x128xf32>
    %229 = vector.extract_strided_slice %223 {offsets = [0, 64], sizes = [8, 32], strides = [1, 1]} : vector<8x128xf32> to vector<8x32xf32>
    %230 = math.tanh %229 : vector<8x32xf32>
    %231 = vector.extract_strided_slice %228 {offsets = [0, 0], sizes = [8, 32], strides = [1, 1]} : vector<8x128xf32> to vector<8x32xf32>
    %232 = vector.extract_strided_slice %228 {offsets = [0, 32], sizes = [8, 32], strides = [1, 1]} : vector<8x128xf32> to vector<8x32xf32>
    %233 = vector.extract_strided_slice %228 {offsets = [0, 96], sizes = [8, 32], strides = [1, 1]} : vector<8x128xf32> to vector<8x32xf32>
    %234 = arith.mulf %232, %193 : vector<8x32xf32>
    %235 = arith.mulf %231, %230 : vector<8x32xf32>
    %236 = arith.addf %234, %235 : vector<8x32xf32>
    %237 = math.tanh %236 : vector<8x32xf32>
    %238 = arith.mulf %233, %237 : vector<8x32xf32>
    %cst_50 = arith.constant 0.000000e+00 : f32
    %239 = vector.broadcast %cst_50 : f32 to vector<8x32xf32>
    %240 = arith.select %220, %238, %239 : vector<8x32xi1>, vector<8x32xf32>
    %241 = arith.select %220, %238, %192 : vector<8x32xi1>, vector<8x32xf32>
    %242 = arith.select %220, %236, %193 : vector<8x32xi1>, vector<8x32xf32>
    %cst_51 = arith.constant dense<0.000000e+00> : vector<8x128xf32>
    %243 = tpu.matmul %240, %1, %cst_51 {dimension_numbers = #tpu.dot_dimension_numbers<[1], [0], [0], [1], [0, 0, 1, 1], [], []>} : vector<8x32xf32>, vector<32x128xf32>, vector<8x128xf32> -> vector<8x128xf32>
    %cst_52 = arith.constant dense<0.000000e+00> : vector<8x128xf32>
    %244 = tpu.matmul %214, %2, %cst_52 {dimension_numbers = #tpu.dot_dimension_numbers<[1], [0], [0], [1], [0, 0, 1, 1], [], []>} : vector<8x32xf32>, vector<32x128xf32>, vector<8x128xf32> -> vector<8x128xf32>
    %245 = arith.addf %243, %244 : vector<8x128xf32>
    %246 = vector.broadcast %3 : vector<1x128xf32> to vector<8x128xf32>
    %247 = arith.addf %245, %246 : vector<8x128xf32>
    %248 = arith.negf %247 : vector<8x128xf32>
    %249 = math.exp %248 : vector<8x128xf32>
    %cst_53 = arith.constant 1.000000e+00 : f32
    %250 = vector.broadcast %cst_53 : f32 to vector<8x128xf32>
    %251 = arith.addf %250, %249 : vector<8x128xf32>
    %252 = arith.divf %250, %251 : vector<8x128xf32>
    %253 = vector.extract_strided_slice %247 {offsets = [0, 64], sizes = [8, 32], strides = [1, 1]} : vector<8x128xf32> to vector<8x32xf32>
    %254 = math.tanh %253 : vector<8x32xf32>
    %255 = vector.extract_strided_slice %252 {offsets = [0, 0], sizes = [8, 32], strides = [1, 1]} : vector<8x128xf32> to vector<8x32xf32>
    %256 = vector.extract_strided_slice %252 {offsets = [0, 32], sizes = [8, 32], strides = [1, 1]} : vector<8x128xf32> to vector<8x32xf32>
    %257 = vector.extract_strided_slice %252 {offsets = [0, 96], sizes = [8, 32], strides = [1, 1]} : vector<8x128xf32> to vector<8x32xf32>
    %258 = arith.mulf %256, %215 : vector<8x32xf32>
    %259 = arith.mulf %255, %254 : vector<8x32xf32>
    %260 = arith.addf %258, %259 : vector<8x32xf32>
    %261 = math.tanh %260 : vector<8x32xf32>
    %262 = arith.mulf %257, %261 : vector<8x32xf32>
    %263 = arith.select %220, %262, %214 : vector<8x32xi1>, vector<8x32xf32>
    %264 = arith.select %220, %260, %215 : vector<8x32xi1>, vector<8x32xf32>
    %cst_54 = arith.constant 0.000000e+00 : f32
    %265 = vector.broadcast %cst_54 : f32 to vector<8x32xf32>
    %266 = arith.select %220, %262, %265 : vector<8x32xi1>, vector<8x32xf32>
    %267 = vector.extract_strided_slice %17 {offsets = [0, 5], sizes = [8, 1], strides = [1, 1]} : vector<8x8xi1> to vector<8x1xi1>
    %268 = vector.shape_cast %267 : vector<8x1xi1> to vector<8x1xi1>
    %269 = vector.broadcast %268 : vector<8x1xi1> to vector<8x32xi1>
    %270 = vector.extract_strided_slice %14 {offsets = [40, 0], sizes = [8, 128], strides = [1, 1]} : vector<64x128xf32> to vector<8x128xf32>
    %cst_55 = arith.constant dense<0.000000e+00> : vector<8x128xf32>
    %271 = tpu.matmul %241, %0, %cst_55 {dimension_numbers = #tpu.dot_dimension_numbers<[1], [0], [0], [1], [0, 0, 1, 1], [], []>} : vector<8x32xf32>, vector<32x128xf32>, vector<8x128xf32> -> vector<8x128xf32>
    %272 = arith.addf %270, %271 : vector<8x128xf32>
    %273 = arith.negf %272 : vector<8x128xf32>
    %274 = math.exp %273 : vector<8x128xf32>
    %cst_56 = arith.constant 1.000000e+00 : f32
    %275 = vector.broadcast %cst_56 : f32 to vector<8x128xf32>
    %276 = arith.addf %275, %274 : vector<8x128xf32>
    %277 = arith.divf %275, %276 : vector<8x128xf32>
    %278 = vector.extract_strided_slice %272 {offsets = [0, 64], sizes = [8, 32], strides = [1, 1]} : vector<8x128xf32> to vector<8x32xf32>
    %279 = math.tanh %278 : vector<8x32xf32>
    %280 = vector.extract_strided_slice %277 {offsets = [0, 0], sizes = [8, 32], strides = [1, 1]} : vector<8x128xf32> to vector<8x32xf32>
    %281 = vector.extract_strided_slice %277 {offsets = [0, 32], sizes = [8, 32], strides = [1, 1]} : vector<8x128xf32> to vector<8x32xf32>
    %282 = vector.extract_strided_slice %277 {offsets = [0, 96], sizes = [8, 32], strides = [1, 1]} : vector<8x128xf32> to vector<8x32xf32>
    %283 = arith.mulf %281, %242 : vector<8x32xf32>
    %284 = arith.mulf %280, %279 : vector<8x32xf32>
    %285 = arith.addf %283, %284 : vector<8x32xf32>
    %286 = math.tanh %285 : vector<8x32xf32>
    %287 = arith.mulf %282, %286 : vector<8x32xf32>
    %cst_57 = arith.constant 0.000000e+00 : f32
    %288 = vector.broadcast %cst_57 : f32 to vector<8x32xf32>
    %289 = arith.select %269, %287, %288 : vector<8x32xi1>, vector<8x32xf32>
    %290 = arith.select %269, %287, %241 : vector<8x32xi1>, vector<8x32xf32>
    %291 = arith.select %269, %285, %242 : vector<8x32xi1>, vector<8x32xf32>
    %cst_58 = arith.constant dense<0.000000e+00> : vector<8x128xf32>
    %292 = tpu.matmul %289, %1, %cst_58 {dimension_numbers = #tpu.dot_dimension_numbers<[1], [0], [0], [1], [0, 0, 1, 1], [], []>} : vector<8x32xf32>, vector<32x128xf32>, vector<8x128xf32> -> vector<8x128xf32>
    %cst_59 = arith.constant dense<0.000000e+00> : vector<8x128xf32>
    %293 = tpu.matmul %263, %2, %cst_59 {dimension_numbers = #tpu.dot_dimension_numbers<[1], [0], [0], [1], [0, 0, 1, 1], [], []>} : vector<8x32xf32>, vector<32x128xf32>, vector<8x128xf32> -> vector<8x128xf32>
    %294 = arith.addf %292, %293 : vector<8x128xf32>
    %295 = vector.broadcast %3 : vector<1x128xf32> to vector<8x128xf32>
    %296 = arith.addf %294, %295 : vector<8x128xf32>
    %297 = arith.negf %296 : vector<8x128xf32>
    %298 = math.exp %297 : vector<8x128xf32>
    %cst_60 = arith.constant 1.000000e+00 : f32
    %299 = vector.broadcast %cst_60 : f32 to vector<8x128xf32>
    %300 = arith.addf %299, %298 : vector<8x128xf32>
    %301 = arith.divf %299, %300 : vector<8x128xf32>
    %302 = vector.extract_strided_slice %296 {offsets = [0, 64], sizes = [8, 32], strides = [1, 1]} : vector<8x128xf32> to vector<8x32xf32>
    %303 = math.tanh %302 : vector<8x32xf32>
    %304 = vector.extract_strided_slice %301 {offsets = [0, 0], sizes = [8, 32], strides = [1, 1]} : vector<8x128xf32> to vector<8x32xf32>
    %305 = vector.extract_strided_slice %301 {offsets = [0, 32], sizes = [8, 32], strides = [1, 1]} : vector<8x128xf32> to vector<8x32xf32>
    %306 = vector.extract_strided_slice %301 {offsets = [0, 96], sizes = [8, 32], strides = [1, 1]} : vector<8x128xf32> to vector<8x32xf32>
    %307 = arith.mulf %305, %264 : vector<8x32xf32>
    %308 = arith.mulf %304, %303 : vector<8x32xf32>
    %309 = arith.addf %307, %308 : vector<8x32xf32>
    %310 = math.tanh %309 : vector<8x32xf32>
    %311 = arith.mulf %306, %310 : vector<8x32xf32>
    %312 = arith.select %269, %311, %263 : vector<8x32xi1>, vector<8x32xf32>
    %313 = arith.select %269, %309, %264 : vector<8x32xi1>, vector<8x32xf32>
    %cst_61 = arith.constant 0.000000e+00 : f32
    %314 = vector.broadcast %cst_61 : f32 to vector<8x32xf32>
    %315 = arith.select %269, %311, %314 : vector<8x32xi1>, vector<8x32xf32>
    %316 = vector.extract_strided_slice %17 {offsets = [0, 6], sizes = [8, 1], strides = [1, 1]} : vector<8x8xi1> to vector<8x1xi1>
    %317 = vector.shape_cast %316 : vector<8x1xi1> to vector<8x1xi1>
    %318 = vector.broadcast %317 : vector<8x1xi1> to vector<8x32xi1>
    %319 = vector.extract_strided_slice %14 {offsets = [48, 0], sizes = [8, 128], strides = [1, 1]} : vector<64x128xf32> to vector<8x128xf32>
    %cst_62 = arith.constant dense<0.000000e+00> : vector<8x128xf32>
    %320 = tpu.matmul %290, %0, %cst_62 {dimension_numbers = #tpu.dot_dimension_numbers<[1], [0], [0], [1], [0, 0, 1, 1], [], []>} : vector<8x32xf32>, vector<32x128xf32>, vector<8x128xf32> -> vector<8x128xf32>
    %321 = arith.addf %319, %320 : vector<8x128xf32>
    %322 = arith.negf %321 : vector<8x128xf32>
    %323 = math.exp %322 : vector<8x128xf32>
    %cst_63 = arith.constant 1.000000e+00 : f32
    %324 = vector.broadcast %cst_63 : f32 to vector<8x128xf32>
    %325 = arith.addf %324, %323 : vector<8x128xf32>
    %326 = arith.divf %324, %325 : vector<8x128xf32>
    %327 = vector.extract_strided_slice %321 {offsets = [0, 64], sizes = [8, 32], strides = [1, 1]} : vector<8x128xf32> to vector<8x32xf32>
    %328 = math.tanh %327 : vector<8x32xf32>
    %329 = vector.extract_strided_slice %326 {offsets = [0, 0], sizes = [8, 32], strides = [1, 1]} : vector<8x128xf32> to vector<8x32xf32>
    %330 = vector.extract_strided_slice %326 {offsets = [0, 32], sizes = [8, 32], strides = [1, 1]} : vector<8x128xf32> to vector<8x32xf32>
    %331 = vector.extract_strided_slice %326 {offsets = [0, 96], sizes = [8, 32], strides = [1, 1]} : vector<8x128xf32> to vector<8x32xf32>
    %332 = arith.mulf %330, %291 : vector<8x32xf32>
    %333 = arith.mulf %329, %328 : vector<8x32xf32>
    %334 = arith.addf %332, %333 : vector<8x32xf32>
    %335 = math.tanh %334 : vector<8x32xf32>
    %336 = arith.mulf %331, %335 : vector<8x32xf32>
    %cst_64 = arith.constant 0.000000e+00 : f32
    %337 = vector.broadcast %cst_64 : f32 to vector<8x32xf32>
    %338 = arith.select %318, %336, %337 : vector<8x32xi1>, vector<8x32xf32>
    %339 = arith.select %318, %336, %290 : vector<8x32xi1>, vector<8x32xf32>
    %340 = arith.select %318, %334, %291 : vector<8x32xi1>, vector<8x32xf32>
    %cst_65 = arith.constant dense<0.000000e+00> : vector<8x128xf32>
    %341 = tpu.matmul %338, %1, %cst_65 {dimension_numbers = #tpu.dot_dimension_numbers<[1], [0], [0], [1], [0, 0, 1, 1], [], []>} : vector<8x32xf32>, vector<32x128xf32>, vector<8x128xf32> -> vector<8x128xf32>
    %cst_66 = arith.constant dense<0.000000e+00> : vector<8x128xf32>
    %342 = tpu.matmul %312, %2, %cst_66 {dimension_numbers = #tpu.dot_dimension_numbers<[1], [0], [0], [1], [0, 0, 1, 1], [], []>} : vector<8x32xf32>, vector<32x128xf32>, vector<8x128xf32> -> vector<8x128xf32>
    %343 = arith.addf %341, %342 : vector<8x128xf32>
    %344 = vector.broadcast %3 : vector<1x128xf32> to vector<8x128xf32>
    %345 = arith.addf %343, %344 : vector<8x128xf32>
    %346 = arith.negf %345 : vector<8x128xf32>
    %347 = math.exp %346 : vector<8x128xf32>
    %cst_67 = arith.constant 1.000000e+00 : f32
    %348 = vector.broadcast %cst_67 : f32 to vector<8x128xf32>
    %349 = arith.addf %348, %347 : vector<8x128xf32>
    %350 = arith.divf %348, %349 : vector<8x128xf32>
    %351 = vector.extract_strided_slice %345 {offsets = [0, 64], sizes = [8, 32], strides = [1, 1]} : vector<8x128xf32> to vector<8x32xf32>
    %352 = math.tanh %351 : vector<8x32xf32>
    %353 = vector.extract_strided_slice %350 {offsets = [0, 0], sizes = [8, 32], strides = [1, 1]} : vector<8x128xf32> to vector<8x32xf32>
    %354 = vector.extract_strided_slice %350 {offsets = [0, 32], sizes = [8, 32], strides = [1, 1]} : vector<8x128xf32> to vector<8x32xf32>
    %355 = vector.extract_strided_slice %350 {offsets = [0, 96], sizes = [8, 32], strides = [1, 1]} : vector<8x128xf32> to vector<8x32xf32>
    %356 = arith.mulf %354, %313 : vector<8x32xf32>
    %357 = arith.mulf %353, %352 : vector<8x32xf32>
    %358 = arith.addf %356, %357 : vector<8x32xf32>
    %359 = math.tanh %358 : vector<8x32xf32>
    %360 = arith.mulf %355, %359 : vector<8x32xf32>
    %361 = arith.select %318, %360, %312 : vector<8x32xi1>, vector<8x32xf32>
    %362 = arith.select %318, %358, %313 : vector<8x32xi1>, vector<8x32xf32>
    %cst_68 = arith.constant 0.000000e+00 : f32
    %363 = vector.broadcast %cst_68 : f32 to vector<8x32xf32>
    %364 = arith.select %318, %360, %363 : vector<8x32xi1>, vector<8x32xf32>
    %365 = vector.extract_strided_slice %17 {offsets = [0, 7], sizes = [8, 1], strides = [1, 1]} : vector<8x8xi1> to vector<8x1xi1>
    %366 = vector.shape_cast %365 : vector<8x1xi1> to vector<8x1xi1>
    %367 = vector.broadcast %366 : vector<8x1xi1> to vector<8x32xi1>
    %368 = vector.extract_strided_slice %14 {offsets = [56, 0], sizes = [8, 128], strides = [1, 1]} : vector<64x128xf32> to vector<8x128xf32>
    %cst_69 = arith.constant dense<0.000000e+00> : vector<8x128xf32>
    %369 = tpu.matmul %339, %0, %cst_69 {dimension_numbers = #tpu.dot_dimension_numbers<[1], [0], [0], [1], [0, 0, 1, 1], [], []>} : vector<8x32xf32>, vector<32x128xf32>, vector<8x128xf32> -> vector<8x128xf32>
    %370 = arith.addf %368, %369 : vector<8x128xf32>
    %371 = arith.negf %370 : vector<8x128xf32>
    %372 = math.exp %371 : vector<8x128xf32>
    %cst_70 = arith.constant 1.000000e+00 : f32
    %373 = vector.broadcast %cst_70 : f32 to vector<8x128xf32>
    %374 = arith.addf %373, %372 : vector<8x128xf32>
    %375 = arith.divf %373, %374 : vector<8x128xf32>
    %376 = vector.extract_strided_slice %370 {offsets = [0, 64], sizes = [8, 32], strides = [1, 1]} : vector<8x128xf32> to vector<8x32xf32>
    %377 = math.tanh %376 : vector<8x32xf32>
    %378 = vector.extract_strided_slice %375 {offsets = [0, 0], sizes = [8, 32], strides = [1, 1]} : vector<8x128xf32> to vector<8x32xf32>
    %379 = vector.extract_strided_slice %375 {offsets = [0, 32], sizes = [8, 32], strides = [1, 1]} : vector<8x128xf32> to vector<8x32xf32>
    %380 = vector.extract_strided_slice %375 {offsets = [0, 96], sizes = [8, 32], strides = [1, 1]} : vector<8x128xf32> to vector<8x32xf32>
    %381 = arith.mulf %379, %340 : vector<8x32xf32>
    %382 = arith.mulf %378, %377 : vector<8x32xf32>
    %383 = arith.addf %381, %382 : vector<8x32xf32>
    %384 = math.tanh %383 : vector<8x32xf32>
    %385 = arith.mulf %380, %384 : vector<8x32xf32>
    %cst_71 = arith.constant 0.000000e+00 : f32
    %386 = vector.broadcast %cst_71 : f32 to vector<8x32xf32>
    %387 = arith.select %367, %385, %386 : vector<8x32xi1>, vector<8x32xf32>
    %388 = arith.select %367, %385, %339 : vector<8x32xi1>, vector<8x32xf32>
    %389 = arith.select %367, %383, %340 : vector<8x32xi1>, vector<8x32xf32>
    %cst_72 = arith.constant dense<0.000000e+00> : vector<8x128xf32>
    %390 = tpu.matmul %387, %1, %cst_72 {dimension_numbers = #tpu.dot_dimension_numbers<[1], [0], [0], [1], [0, 0, 1, 1], [], []>} : vector<8x32xf32>, vector<32x128xf32>, vector<8x128xf32> -> vector<8x128xf32>
    %cst_73 = arith.constant dense<0.000000e+00> : vector<8x128xf32>
    %391 = tpu.matmul %361, %2, %cst_73 {dimension_numbers = #tpu.dot_dimension_numbers<[1], [0], [0], [1], [0, 0, 1, 1], [], []>} : vector<8x32xf32>, vector<32x128xf32>, vector<8x128xf32> -> vector<8x128xf32>
    %392 = arith.addf %390, %391 : vector<8x128xf32>
    %393 = vector.broadcast %3 : vector<1x128xf32> to vector<8x128xf32>
    %394 = arith.addf %392, %393 : vector<8x128xf32>
    %395 = arith.negf %394 : vector<8x128xf32>
    %396 = math.exp %395 : vector<8x128xf32>
    %cst_74 = arith.constant 1.000000e+00 : f32
    %397 = vector.broadcast %cst_74 : f32 to vector<8x128xf32>
    %398 = arith.addf %397, %396 : vector<8x128xf32>
    %399 = arith.divf %397, %398 : vector<8x128xf32>
    %400 = vector.extract_strided_slice %394 {offsets = [0, 64], sizes = [8, 32], strides = [1, 1]} : vector<8x128xf32> to vector<8x32xf32>
    %401 = math.tanh %400 : vector<8x32xf32>
    %402 = vector.extract_strided_slice %399 {offsets = [0, 0], sizes = [8, 32], strides = [1, 1]} : vector<8x128xf32> to vector<8x32xf32>
    %403 = vector.extract_strided_slice %399 {offsets = [0, 32], sizes = [8, 32], strides = [1, 1]} : vector<8x128xf32> to vector<8x32xf32>
    %404 = vector.extract_strided_slice %399 {offsets = [0, 96], sizes = [8, 32], strides = [1, 1]} : vector<8x128xf32> to vector<8x32xf32>
    %405 = arith.mulf %403, %362 : vector<8x32xf32>
    %406 = arith.mulf %402, %401 : vector<8x32xf32>
    %407 = arith.addf %405, %406 : vector<8x32xf32>
    %408 = math.tanh %407 : vector<8x32xf32>
    %409 = arith.mulf %404, %408 : vector<8x32xf32>
    %410 = arith.select %367, %409, %361 : vector<8x32xi1>, vector<8x32xf32>
    %411 = arith.select %367, %407, %362 : vector<8x32xi1>, vector<8x32xf32>
    %cst_75 = arith.constant 0.000000e+00 : f32
    %412 = vector.broadcast %cst_75 : f32 to vector<8x32xf32>
    %413 = arith.select %367, %409, %412 : vector<8x32xi1>, vector<8x32xf32>
    %414 = tpu.concatenate %70, %119, %168, %217, %266, %315, %364, %413 in 1 : vector<8x32xf32>, vector<8x32xf32>, vector<8x32xf32>, vector<8x32xf32>, vector<8x32xf32>, vector<8x32xf32>, vector<8x32xf32>, vector<8x32xf32> -> vector<8x256xf32>
    %c0_76 = arith.constant 0 : index
    %c0_77 = arith.constant 0 : index
    %415 = vector.load %arg8[%c0_76, %c0_77] : memref<256x256xf32, #tpu.memory_space<vmem>>, vector<256x256xf32>
    %cst_78 = arith.constant dense<0.000000e+00> : vector<8x256xf32>
    %416 = tpu.matmul %414, %415, %cst_78 {dimension_numbers = #tpu.dot_dimension_numbers<[1], [0], [0], [1], [0, 0, 1, 1], [], []>} : vector<8x256xf32>, vector<256x256xf32>, vector<8x256xf32> -> vector<8x256xf32>
    %c0_79 = arith.constant 0 : index
    %c0_80 = arith.constant 0 : index
    %417 = vector.load %arg9[%c0_79, %c0_80] : memref<1x256xf32, #tpu.memory_space<vmem>>, vector<1x256xf32>
    %418 = vector.broadcast %417 : vector<1x256xf32> to vector<8x256xf32>
    %419 = arith.addf %416, %418 : vector<8x256xf32>
    %c0_81 = arith.constant 0 : index
    %c0_82 = arith.constant 0 : index
    %420 = vector.load %arg10[%c0_81, %c0_82] : memref<8x256xf32, #tpu.memory_space<vmem>>, vector<8x256xf32>
    tpu.vector_store %arg10[%c0_81, %c0_82], %419 {strides = array<i32>} : memref<8x256xf32, #tpu.memory_space<vmem>>, vector<8x256xf32>,
    %c0_83 = arith.constant 0 : index
    %c0_84 = arith.constant 0 : index
    %c0_85 = arith.constant 0 : index
    %421 = vector.load %arg11[%c0_83, %c0_84, %c0_85] : memref<2x8x32xf32, #tpu.memory_space<vmem>>, vector<1x8x32xf32>
    %422 = vector.shape_cast %421 : vector<1x8x32xf32> to vector<8x32xf32>
    %423 = vector.shape_cast %388 : vector<8x32xf32> to vector<1x8x32xf32>
    tpu.vector_store %arg11[%c0_83, %c0_84, %c0_85], %423 {strides = array<i32>} : memref<2x8x32xf32, #tpu.memory_space<vmem>>, vector<1x8x32xf32>,
    %c1 = arith.constant 1 : index
    %c0_86 = arith.constant 0 : index
    %c0_87 = arith.constant 0 : index
    %424 = vector.load %arg11[%c1, %c0_86, %c0_87] : memref<2x8x32xf32, #tpu.memory_space<vmem>>, vector<1x8x32xf32>
    %425 = vector.shape_cast %424 : vector<1x8x32xf32> to vector<8x32xf32>
    %426 = vector.shape_cast %410 : vector<8x32xf32> to vector<1x8x32xf32>
    tpu.vector_store %arg11[%c1, %c0_86, %c0_87], %426 {strides = array<i32>} : memref<2x8x32xf32, #tpu.memory_space<vmem>>, vector<1x8x32xf32>,
    %c0_88 = arith.constant 0 : index
    %c0_89 = arith.constant 0 : index
    %c0_90 = arith.constant 0 : index
    %427 = vector.load %arg12[%c0_88, %c0_89, %c0_90] : memref<2x8x32xf32, #tpu.memory_space<vmem>>, vector<1x8x32xf32>
    %428 = vector.shape_cast %427 : vector<1x8x32xf32> to vector<8x32xf32>
    %429 = vector.shape_cast %389 : vector<8x32xf32> to vector<1x8x32xf32>
    tpu.vector_store %arg12[%c0_88, %c0_89, %c0_90], %429 {strides = array<i32>} : memref<2x8x32xf32, #tpu.memory_space<vmem>>, vector<1x8x32xf32>,
    %c1_91 = arith.constant 1 : index
    %c0_92 = arith.constant 0 : index
    %c0_93 = arith.constant 0 : index
    %430 = vector.load %arg12[%c1_91, %c0_92, %c0_93] : memref<2x8x32xf32, #tpu.memory_space<vmem>>, vector<1x8x32xf32>
    %431 = vector.shape_cast %430 : vector<1x8x32xf32> to vector<8x32xf32>
    %432 = vector.shape_cast %411 : vector<8x32xf32> to vector<1x8x32xf32>
    tpu.vector_store %arg12[%c1_91, %c0_92, %c0_93], %432 {strides = array<i32>} : memref<2x8x32xf32, #tpu.memory_space<vmem>>, vector<1x8x32xf32>,
    return
  }
}

</mosaic_0001>

<bundles_post_ra>
// kernel: charrnn_forward.1
= control target key start
LH: loop header
LB: loop body
LE: loop exit
PB: predicated region body
PF: predicated region fallthrough
CT: control target
= control target key end

     0   :  { %18 = vsyncpa [#allocation3], 0  ;;  %s4618_s0 = inlined_call_operand.vmem [shape: s32[64,1], index: 0, kind: input, shape index: {}]   ;;  %s4619_s1 = inlined_call_operand.vmem [shape: f32[8,8], index: 1, kind: input, shape index: {}]   ;;  %s4620_s2 = inlined_call_operand.vmem [shape: f32[32,128], index: 2, kind: input, shape index: {}]   ;;  %s4621_s3 = inlined_call_operand.vmem [shape: f32[1,128], index: 3, kind: input, shape index: {}]   ;;  %s4622_s4 = inlined_call_operand.vmem [shape: f32[32,128], index: 4, kind: input, shape index: {}]   ;;  %s4623_s5 = inlined_call_operand.vmem [shape: f32[32,128], index: 5, kind: input, shape index: {}]   ;;  %s4624_s6 = inlined_call_operand.hbm [shape: f32[32,128], index: 6, kind: input, shape index: {}]   ;;  %s4625_s7 = inlined_call_operand.vmem [shape: f32[1,128], index: 7, kind: input, shape index: {}]   ;;  %s4626_s8 = inlined_call_operand.hbm [shape: f32[256,256], index: 8, kind: input, shape index: {}]   ;;  %s4627_s9 = inlined_call_operand.vmem [shape: f32[1,256], index: 9, kind: input, shape index: {}]   ;;  %s4628_s10 = inlined_call_operand.vmem [shape: f32[8,256], index: 10, kind: output, shape index: {0}]   ;;  %s4629_s11 = inlined_call_operand.hbm [shape: f32[2,8,32], index: 11, kind: output, shape index: {1}]   ;;  %s4630_s12 = inlined_call_operand.hbm [shape: f32[2,8,32], index: 12, kind: output, shape index: {2}]  }
   0x1   :  { %19 = vsyncpa [#allocation6], 0 }
   0x2   :  { %20 = vsyncpa [#allocation4], 0 }
   0x3   :  { %21 = vsyncpa [#allocation9], 0  ;;  %s3748_s21 = smov [#allocation2]   ;;  %s3652_s25 = scalar_lea.hbm %s4624_s6, 512 }
   0x4   :  { %s39_s22 = sshll.u32 %s3748_s21, 4  ;;  %p3653_p0 = scmp.ne.s32.totalorder %s4624_s6, %s3652_s25  ;;  %s40_s22 = int_to_ptr.vmem [resolvable:$true] %s39_s22 }
   0x5   :  { %p3656_p1 = scmp.lt.u32.totalorder %s3652_s25, %s4624_s6 }
   0x7   :  { %p3658_p2 = pnand %p3656_p1, %p3653_p0 }
   0x9   :  { %3661 = shalt.err (!%p3658_p2)
}
   0xa   :  { %s3662_s30 = scalar_lea.vmem %s40_s22, 512  ;;  %p3667_p4 = scmp.lt.s32.totalorder %s40_s22, %s40_s22 }
   0xb   :  { %p3663_p3 = scmp.ne.s32.totalorder %s40_s22, %s3662_s30  ;;  %p3668_p5 = scmp.lt.s32.totalorder %s3662_s30, %s3662_s30 }
   0xd   :  { %p3669_p6 = por %p3668_p5, %p3667_p4 }
   0xf   :  { %p3670_p7 = pnand %p3669_p6, %p3663_p3 }
  0x11   :  { %3673 = shalt.err (!%p3670_p7)
}
  0x12   :  { %s3749_s13 = smov 128   ;;  %s3750_s14 = smov 8  }
  0x13   :  { %45 = dma.hbm_to_vmem [thread:$0]  %s4624_s6, 512, %s40_s22, [#allocation3], %s3749_s13, %s3749_s13, %s3750_s14  }
  0x14   :  { %s3751_s17 = smov [#allocation5]   ;;  %s3674_s21 = scalar_lea.hbm %s4626_s8, 8192 }
  0x15   :  { %s53_s18 = sshll.u32 %s3751_s17, 4  ;;  %p3675_p8 = scmp.ne.s32.totalorder %s4626_s8, %s3674_s21  ;;  %s54_s18 = int_to_ptr.vmem [resolvable:$true] %s53_s18 }
  0x16   :  { %p3678_p9 = scmp.lt.u32.totalorder %s3674_s21, %s4626_s8 }
  0x18   :  { %p3680_p10 = pnand %p3678_p9, %p3675_p8 }
  0x1a   :  { %3683 = shalt.err (!%p3680_p10)
}
  0x1b   :  { %s3684_s27 = scalar_lea.vmem %s54_s18, 8192  ;;  %p3689_p12 = scmp.lt.s32.totalorder %s54_s18, %s54_s18 }
  0x1c   :  { %p3685_p11 = scmp.ne.s32.totalorder %s54_s18, %s3684_s27  ;;  %p3690_p13 = scmp.lt.s32.totalorder %s3684_s27, %s3684_s27 }
  0x1e   :  { %p3691_p0 = por %p3690_p13, %p3689_p12 }
  0x20   :  { %p3692_p1 = pnand %p3691_p0, %p3685_p11 }
  0x22   :  { %3695 = shalt.err (!%p3692_p1)
}
  0x23   :  { %s3752_s6 = smov 256   ;;  %s3753_s22 = smov 16  }
  0x24   :  { %59 = dma.hbm_to_vmem [thread:$0]  %s4626_s8, 8192, %s54_s18, [#allocation6], %s3752_s6, %s3752_s6, %s3753_s22  }
  0x25   :  { %3740 = dma.done.wait [#allocation3], 512  }
  0x26   :  { %3741 = vsyncadd [#allocation3], 4294966784 }
  0x27   :  { %3742 = dma.done.wait [#allocation6], 8192  }
  0x28   :  { %3743 = vsyncadd [#allocation6], 4294959104  ;;  %v3754_v0 = vmov 0   ;;  %v83_v1 = vld [vmem:[%s4618_s0 + $0x10] sm:$0xff]  ;;  %v81_v2 = vld [vmem:[%s4618_s0] sm:$0xff]  ;;  %v3755_v15 = vmov 0.0|0.0   ;;  %v89_v23 = vlaneseq }
  0x29   :  { %3504 = vset.pattern.permute.xlu1 %v3754_v0  ;;  %3503 = vset.pattern.permute.xlu0 %v3754_v0  ;;  %v84_v3 = vld [vmem:[%s4618_s0 + $0x18] sm:$0xff]  ;;  %v82_v4 = vld [vmem:[%s4618_s0 + $0x8] sm:$0xff]  ;;  %v139_v5 = vld [vmem:[%s4620_s2] sm:$0xff]  ;;  %vm3756_vm0 = vmmov 0   ;;  %v3757_v22 = vmov 0.0   ;;  %vm150_vm1 = vcmask 261120  }
  0x2a   :  { %98 = vperm.xlu1 %3504, %v83_v1   ;;  %92 = vperm.xlu0 %3503, %v81_v2   ;;  %v140_v6 = vld [vmem:[%s4620_s2 + $0x8] sm:$0xff]  ;;  %v141_v7 = vld [vmem:[%s4620_s2 + $0x10] sm:$0xff]  ;;  %v142_v9 = vld [vmem:[%s4620_s2 + $0x18] sm:$0xff]  ;;  %v90_v24 = vand.u32 127, %v89_v23  ;;  %s3758_s6 = smov 64   ;;  %s3759_s22 = smov 32  }
  0x2b   :  { %v3265_v8 = vpack.c.bf16 %v140_v6, %v139_v5  ;;  %v3269_v10 = vpack.c.bf16 %v142_v9, %v141_v7  ;;  %v86_v11 = vld [vmem:[%s4618_s0 + $0x28] sm:$0xff]  ;;  %v85_v12 = vld [vmem:[%s4618_s0 + $0x20] sm:$0xff]  ;;  %3309 = vmatprep.subr.bf16.mxu0 %v3755_v15  ;;  %v88_v17 = vld [vmem:[%s4618_s0 + $0x38] sm:$0xff]  ;;  %3075 = vmatprep.mubr.msk.f32.mxu0 %vm3756_vm0, %v3757_v22  ;;  %s3768_s20 = smov [#allocation7]   ;;  %s3769_s23 = smov [#allocation8]  }
  0x2c   :  { %v68_v13 = vld [vmem:[%s4622_s4] sm:$0xff]  ;;  %v69_v14 = vld [vmem:[%s4622_s4 + $0x8] sm:$0xff]  ;;  %v87_v18 = vld [vmem:[%s4618_s0 + $0x30] sm:$0xff]  ;;  %s2762_s21 = sshll.u32 %s3768_s20, 4  ;;  %s2774_s24 = sshll.u32 %s3769_s23, 4  ;;  %s2763_s21 = int_to_ptr.vmem [resolvable:$true] %s2762_s21  ;;  %s2775_s24 = int_to_ptr.vmem [resolvable:$true] %s2774_s24 }
  0x2d   :  { %3266 = vmatprep.subr.bf16.mxu1 %v3265_v8  ;;  %v3901_v16 = vpack.c.bf16 %v69_v14, %v68_v13  ;;  %v70_v19 = vld [vmem:[%s4622_s4 + $0x10] sm:$0xff]  ;;  %v71_v20 = vld [vmem:[%s4622_s4 + $0x18] sm:$0xff]  ;;  %v2801_v41 = vld [vmem:[%s4621_s3] ss:$0 sm:$0xff]  ;;  %s3696_s25 = scalar_lea.vmem %s2763_s21, 256  ;;  %p3701_p3 = scmp.lt.s32.totalorder %s2763_s21, %s2763_s21 }
  0x2e   :  { %101 = vperm.xlu1 %3504, %v84_v3   ;;  %95 = vperm.xlu0 %3503, %v82_v4   ;;  %v3918_v21 = vpack.c.bf16 %v71_v20, %v70_v19  ;;  %v280_v61 = vld [vmem:[%s4619_s1] sm:$0xff]  ;;  %v79_v13 = vld [vmem:[#allocation2 + $0x18] sm:$0xff]  ;;  %v74_v20 = vld [vmem:[%s4623_s5 + $0x10] sm:$0xff]  ;;  %p3697_p2 = scmp.ne.s32.totalorder %s2763_s21, %s3696_s25  ;;  %p3702_p4 = scmp.lt.s32.totalorder %s3696_s25, %s3696_s25 }
  0x2f   :  { %3268 = vmatpush3.bf16.msra.mxu1 %v3265_v8  ;;  %3311 = vmatpush3.bf16.msra.mxu0 %v3901_v16  ;;  %vm281_vm10 = vcmp.gt.f32.partialorder %v280_v61, 0.5 }
  0x30   :  { %3270 = vmatprep.subr.bf16.mxu1 %v3269_v10  ;;  %3312 = vmatprep.subr.bf16.mxu0 %v3755_v15  ;;  %v3972_v63 = vsel %vm281_vm10, 1, %v3754_v0  ;;  %v76_v0 = vld [vmem:[#allocation2] sm:$0xff]  ;;  %p3703_p5 = por %p3702_p4, %p3701_p3 }
  0x32   :  { %107 = vperm.xlu1 %3504, %v86_v11   ;;  %104 = vperm.xlu0 %3503, %v85_v12   ;;  %v78_v11 = vld [vmem:[#allocation2 + $0x10] sm:$0xff]  ;;  %p3704_p6 = pnand %p3703_p5, %p3697_p2 }
  0x33   :  { %3272 = vmatpush3.bf16.msra.mxu1 %v3269_v10  ;;  %3314 = vmatpush3.bf16.msra.mxu0 %v3918_v21  ;;  %v77_v10 = vld [vmem:[#allocation2 + $0x8] sm:$0xff]  ;;  %v3982_v14 = vpack.c.bf16 %v79_v13, %v78_v11 }
  0x34   :  { %3273 = vmatprep.subr.bf16.mxu1 %v3755_v15  ;;  %3321 = vmatprep.subr.bf16.mxu0 %v3755_v15  ;;  %v3979_v12 = vpack.c.bf16 %v77_v10, %v76_v0 }
  0x36   :  { %113 = vperm.xlu1 %3504, %v88_v17   ;;  %110 = vperm.xlu0 %3503, %v87_v18   ;;  %v72_v17 = vld [vmem:[%s4623_s5] sm:$0xff]  ;;  %v73_v18 = vld [vmem:[%s4623_s5 + $0x8] sm:$0xff] }
  0x37   :  { %v3992_v19 = vpack.c.bf16 %v73_v18, %v72_v17 }
  0xa9   :  { %v99_v25 = vpop.permute.xlu1 %98  ;;  %v93_v26 = vpop.permute.xlu0 %92 }
  0xaa   :  { %vm115_vm2 = vcmp.eq.s32.totalorder %v93_v26, %v90_v24  ;;  %vm117_vm3 = vcmp.eq.s32.totalorder %v99_v25, %v90_v24 }
  0xab   :  { %v2793_v27 = vsel %vm115_vm2, 1.0, %v3757_v22  ;;  %v2795_v30 = vsel %vm117_vm3, 1.0, %v3757_v22 }
  0xac   :  { %2989 = vmatprep.mubr.msk.f32.mxu1 %vm150_vm1, %v2793_v27 }
  0xad   :  { %v102_v28 = vpop.permute.xlu1 %101  ;;  %v96_v29 = vpop.permute.xlu0 %95 }
  0xae   :  { %vm116_vm4 = vcmp.eq.s32.totalorder %v96_v29, %v90_v24  ;;  %vm118_vm5 = vcmp.eq.s32.totalorder %v102_v28, %v90_v24 }
  0xaf   :  { %v2794_v31 = vsel %vm116_vm4, 1.0, %v3757_v22  ;;  %v2796_v34 = vsel %vm118_vm5, 1.0, %v3757_v22  ;;  %vm2577_vm4 = vcmask 523264   ;;  %vm2579_vm5 = vcmask 785408  }
  0xb0   :  { %2990 = vmatmul.mubr.msk.f32.vlgmr.msra.gmra.mrb[0].mxu1 %vm150_vm1, %v2794_v31 }
  0xb1   :  { %3275 = vmatpush3.bf16.msra.mxu1 %v3901_v16  ;;  %v108_v32 = vpop.permute.xlu1 %107  ;;  %2992 = vmatprep.mubr.msk.f32.mxu1 %vm150_vm1, %v2795_v30  ;;  %v105_v33 = vpop.permute.xlu0 %104 }
  0xb2   :  { %vm119_vm6 = vcmp.eq.s32.totalorder %v105_v33, %v90_v24  ;;  %3276 = vmatprep.subr.bf16.mxu1 %v3755_v15  ;;  %vm120_vm7 = vcmp.eq.s32.totalorder %v108_v32, %v90_v24 }
  0xb3   :  { %v2797_v35 = vsel %vm119_vm6, 1.0, %v3757_v22  ;;  %v2798_v38 = vsel %vm120_vm7, 1.0, %v3757_v22 }
  0xb4   :  { %2993 = vmatmul.mubr.msk.f32.gmra.mrb[2].mxu1 %vm150_vm1, %v2796_v34  ;;  %v4037_v34 = vld [vmem:[%s4625_s7] ss:$0 sm:$0xff] }
  0xb5   :  { %v114_v36 = vpop.permute.xlu1 %113  ;;  %2995 = vmatprep.mubr.msk.f32.mxu1 %vm150_vm1, %v2797_v35  ;;  %v111_v37 = vpop.permute.xlu0 %110  ;;  %3278 = vmatpush3.bf16.msra.mxu1 %v3918_v21 }
  0xb6   :  { %vm121_vm8 = vcmp.eq.s32.totalorder %v111_v37, %v90_v24  ;;  %3279 = vmatprep.subr.bf16.mxu1 %v3755_v15  ;;  %vm122_vm9 = vcmp.eq.s32.totalorder %v114_v36, %v90_v24  ;;  %v75_v24 = vld [vmem:[%s4623_s5 + $0x18] sm:$0xff] }
  0xb7   :  { %v2799_v39 = vsel %vm121_vm8, 1.0, %v3757_v22  ;;  %v2800_v40 = vsel %vm122_vm9, 1.0, %v3757_v22  ;;  %v4004_v26 = vpack.c.bf16 %v75_v24, %v74_v20 }
  0xb8   :  { %2996 = vmatmul.mubr.msk.f32.gmra.mrb[4].mxu1 %vm150_vm1, %v2798_v38 }
  0xb9   :  { %2998 = vmatprep.mubr.msk.f32.mxu1 %vm150_vm1, %v2799_v39 }
  0xbc   :  { %2999 = vmatmul.mubr.msk.f32.gmra.mrb[6].mxu1 %vm150_vm1, %v2800_v40 }
  0xbd   :  { %3009 = vmatprep.mubr.msk.f32.mxu1 %vm3756_vm0, %v3757_v22 }
  0xc0   :  { %3010 = vmatmul.mubr.f32.vlgmr.msra.gmra.mrb[8].mxu1 %v3757_v22 }
  0xc1   :  { %3020 = vmatprep.mubr.msk.f32.mxu1 %vm3756_vm0, %v3757_v22  ;;  %3281 = vmatpush3.bf16.msra.mxu1 %v3979_v12 }
  0xc2   :  { %3282 = vmatprep.subr.bf16.mxu1 %v3755_v15 }
  0xc5   :  { %3284 = vmatpush3.bf16.msra.mxu1 %v3982_v14 }
  0xc6   :  { %3285 = vmatprep.subr.bf16.mxu1 %v3755_v15 }
  0xc8   :  { %3021 = vmatmul.mubr.f32.vlgmr.msra.gmra.mrb[10].mxu1 %v3757_v22 }
  0xc9   :  { %3287 = vmatpush3.bf16.msra.mxu1 %v3992_v19  ;;  %3031 = vmatprep.mubr.msk.f32.mxu1 %vm3756_vm0, %v3757_v22 }
  0xca   :  { %3288 = vmatprep.subr.bf16.mxu1 %v3755_v15 }
  0xcd   :  { %3290 = vmatpush3.bf16.msra.mxu1 %v4004_v26 }
  0xce   :  { %3291 = vmatprep.subr.bf16.mxu1 %v3755_v15 }
 0x183   :  { %v2991_v42 = vpop.f32.mrb[0].mxu1 }
 0x184   :  { %v3953_v43 = vadd.f32 %v2991_v42, %v2801_v41  ;;  %v241_v44 = vpop.f32.mrb[1].mxu1  ;;  %v3760_v42 = vmov 1  }
 0x185   :  { %v242_v57 = vadd.f32 %v2801_v41, %v241_v44 }
 0x187   :  { %v2994_v45 = vpop.f32.mrb[2].mxu1 }
 0x188   :  { %v3955_v46 = vadd.f32 %v2994_v45, %v2801_v41  ;;  %v251_v47 = vpop.f32.mrb[3].mxu1 }
 0x189   :  { %v3957_v48 = vadd.f32 %v2801_v41, %v251_v47 }
 0x18b   :  { %v2997_v49 = vpop.f32.mrb[4].mxu1 }
 0x18c   :  { %v3959_v50 = vadd.f32 %v2997_v49, %v2801_v41  ;;  %v261_v51 = vpop.f32.mrb[5].mxu1 }
 0x18d   :  { %v3961_v52 = vadd.f32 %v2801_v41, %v261_v51 }
 0x18f   :  { %v3000_v53 = vpop.f32.mrb[6].mxu1 }
 0x190   :  { %v3963_v54 = vadd.f32 %v3000_v53, %v2801_v41  ;;  %v271_v55 = vpop.f32.mrb[7].mxu1 }
 0x191   :  { %v3965_v56 = vadd.f32 %v2801_v41, %v271_v55 }
 0x193   :  { %v356_v58 = vpop.f32.mrb[8].mxu1 }
 0x194   :  { %v360_v59 = vadd.f32 %v356_v58, %v242_v57  ;;  %v3011_v60 = vpop.f32.mrb[9].mxu1 }
 0x196   :  { %3523 = vtanh.f32 %v360_v59  ;;  %v2810_v1 = vmul.f32 -1.442695, %v360_v59 }
 0x198   :  { %3525 = vpow2.f32 %v2810_v1 }
 0x19b   :  { %v453_v31 = vpop.f32.mrb[10].mxu1 }
 0x19c   :  { %v3022_v32 = vpop.f32.mrb[11].mxu1 }
 0x1a0   :  { %v3524_v62 = vpop.eup %3523 }
 0x1a1   :  { %370 = vrot.lane.b32.xlu0 %v3524_v62, %s3758_s6 }
 0x1a2   :  { %v3526_v2 = vpop.eup %3525 }
 0x1a3   :  { %v364_v3 = vadd.f32 1.0, %v3526_v2 }
 0x1a5   :  { %284 = vperm.xlu0 %3503, %v3972_v63   ;;  %3527 = vrcp.f32 %v364_v3 }
 0x1a9   :  { %3505 = vset.pattern.permute.xlu0 %v3760_v42 }
 0x1af   :  { %v3528_v4 = vpop.eup %3527 }
 0x1b0   :  { %v368_v7 = vmul.f32 0.0, %v3528_v4 }
 0x213   :  { %v371_v5 = vpop.permute.xlu0 %370 }
 0x214   :  { %v373_v6 = vmul.f32 %v3528_v4, %v371_v5 }
 0x216   :  { %375 = vrot.lane.b32.xlu1 %v373_v6, %s3759_s22 }
 0x224   :  { %v4011_v27 = vpop.permute.xlu0 %284 }
 0x225   :  { %vm286_vm11 = vcmp.eq.s32.totalorder %v4011_v27, 1 }
 0x288   :  { %v376_v8 = vpop.permute.xlu1 %375 }
 0x289   :  { %v3976_v9 = vadd.f32 %v376_v8, %v368_v7 }
 0x28b   :  { %3529 = vtanh.f32 %v3976_v9 }
 0x295   :  { %v3530_v25 = vpop.eup %3529 }
 0x296   :  { %381 = vrot.lane.b32.xlu1 %v3530_v25, %s3758_s6 }
 0x308   :  { %v382_v28 = vpop.permute.xlu1 %381 }
 0x309   :  { %v384_v29 = vmul.f32 %v3528_v4, %v382_v28  ;;  %v4052_v4 = vsel %vm286_vm11, %v3976_v9, 0.0 }
 0x30b   :  { %v4016_v30 = vsel %vm286_vm11, %v384_v29, 0.0 }
 0x30c   :  { %458 = vrot.lane.b32.xlu0 %v4016_v30, %s3759_s22 }
 0x37e   :  { %v459_v33 = vpop.permute.xlu0 %458 }
 0x37f   :  { %3032 = vmatmul.mubr.msk.f32.vlgmr.msra.gmra.mrb[12].mxu1 %vm150_vm1, %v459_v33 }
 0x380   :  { %3293 = vmatpush3.bf16.msra.mxu1 %v3901_v16  ;;  %3042 = vmatprep.mubr.msk.f32.mxu1 %vm3756_vm0, %v3757_v22 }
 0x381   :  { %3294 = vmatprep.subr.bf16.mxu1 %v3755_v15 }
 0x384   :  { %3296 = vmatpush3.bf16.msra.mxu1 %v3918_v21 }
 0x385   :  { %3297 = vmatprep.subr.bf16.mxu1 %v3755_v15 }
 0x387   :  { %3043 = vmatmul.mubr.msk.f32.vlgmr.msra.gmra.mrb[14].mxu1 %vm150_vm1, %v459_v33 }
 0x388   :  { %3299 = vmatpush3.bf16.msra.mxu1 %v3979_v12  ;;  %3053 = vmatprep.mubr.msk.f32.mxu1 %vm3756_vm0, %v3757_v22 }
 0x389   :  { %3300 = vmatprep.subr.bf16.mxu1 %v3755_v15 }
 0x38c   :  { %3302 = vmatpush3.bf16.msra.mxu1 %v3982_v14 }
 0x38d   :  { %3303 = vmatprep.subr.bf16.mxu1 %v3755_v15 }
 0x452   :  { %v528_v35 = vpop.f32.mrb[12].mxu1 }
 0x453   :  { %v529_v36 = vadd.f32 %v528_v35, %v453_v31  ;;  %v3033_v37 = vpop.f32.mrb[13].mxu1 }
 0x455   :  { %v538_v38 = vadd.f32 %v4037_v34, %v529_v36 }
 0x457   :  { %3531 = vtanh.f32 %v538_v38  ;;  %v2813_v47 = vmul.f32 -1.442695, %v538_v38 }
 0x45a   :  { %v635_v39 = vpop.f32.mrb[14].mxu1 }
 0x45b   :  { %v639_v40 = vadd.f32 %v635_v39, %v3953_v43  ;;  %v3044_v41 = vpop.f32.mrb[15].mxu1 }
 0x45d   :  { %3533 = vtanh.f32 %v639_v40  ;;  %v2815_v49 = vmul.f32 -1.442695, %v639_v40  ;;  %v3761_v40 = vmov 2  }
 0x45e   :  { %3535 = vpow2.f32 %v2813_v47 }
 0x45f   :  { %3537 = vpow2.f32 %v2815_v49 }
 0x461   :  { %v3532_v44 = vpop.eup %3531 }
 0x462   :  { %548 = vrot.lane.b32.xlu1 %v3532_v44, %s3758_s6 }
 0x467   :  { %v3534_v45 = vpop.eup %3533 }
 0x468   :  { %649 = vrot.lane.b32.xlu0 %v3534_v45, %s3758_s6  ;;  %v3536_v51 = vpop.eup %3535 }
 0x469   :  { %v542_v53 = vadd.f32 1.0, %v3536_v51  ;;  %v3538_v55 = vpop.eup %3537 }
 0x46a   :  { %v643_v57 = vadd.f32 1.0, %v3538_v55 }
 0x46b   :  { %3539 = vrcp.f32 %v542_v53 }
 0x46c   :  { %3541 = vrcp.f32 %v643_v57 }
 0x475   :  { %v3540_v43 = vpop.eup %3539 }
 0x476   :  { %v3542_v60 = vpop.eup %3541  ;;  %v546_v1 = vmul.f32 0.0, %v3540_v43 }
 0x477   :  { %v647_v5 = vmul.f32 %v3542_v60, %v4052_v4 }
 0x4d4   :  { %v549_v58 = vpop.permute.xlu1 %548 }
 0x4d5   :  { %v551_v59 = vmul.f32 %v3540_v43, %v549_v58 }
 0x4d7   :  { %553 = vrot.lane.b32.xlu1 %v551_v59, %s3759_s22 }
 0x4da   :  { %v650_v61 = vpop.permute.xlu0 %649 }
 0x4db   :  { %v652_v62 = vmul.f32 %v3542_v60, %v650_v61 }
 0x4dd   :  { %654 = vrot.lane.b32.xlu0 %v652_v62, %s3759_s22 }
 0x4e1   :  { %566 = vperm.xlu0 %3505, %v3972_v63  }
 0x4e5   :  { %3506 = vset.pattern.permute.xlu0 %v3761_v40 }
 0x549   :  { %v554_v2 = vpop.permute.xlu1 %553 }
 0x54a   :  { %v4046_v3 = vadd.f32 %v554_v2, %v546_v1 }
 0x54c   :  { %3543 = vtanh.f32 %v4046_v3 }
 0x54f   :  { %v655_v6 = vpop.permute.xlu0 %654 }
 0x550   :  { %v4055_v7 = vadd.f32 %v655_v6, %v647_v5 }
 0x552   :  { %3545 = vtanh.f32 %v4055_v7 }
 0x556   :  { %v3544_v8 = vpop.eup %3543 }
 0x557   :  { %559 = vrot.lane.b32.xlu1 %v3544_v8, %s3758_s6 }
 0x55c   :  { %v3546_v0 = vpop.eup %3545 }
 0x55d   :  { %660 = vrot.lane.b32.xlu1 %v3546_v0, %s3758_s6 }
 0x560   :  { %v4066_v9 = vpop.permute.xlu0 %566 }
 0x561   :  { %vm568_vm12 = vcmp.eq.s32.totalorder %v4066_v9, 1 }
 0x562   :  { %v4120_v62 = vsel %vm568_vm12, %v4055_v7, %v4052_v4 }
 0x5c9   :  { %v560_v10 = vpop.permute.xlu1 %559 }
 0x5ca   :  { %v562_v11 = vmul.f32 %v3540_v43, %v560_v10 }
 0x5cc   :  { %v4062_v13 = vsel %vm286_vm11, %v562_v11, 0.0 }
 0x5cd   :  { %668 = vrot.lane.b32.xlu1 %v4062_v13, %s3759_s22 }
 0x5cf   :  { %v661_v17 = vpop.permute.xlu1 %660 }
 0x5d0   :  { %v663_v18 = vmul.f32 %v3542_v60, %v661_v17  ;;  %v4113_v60 = vsel %vm286_vm11, %v4046_v3, 0.0 }
 0x5d2   :  { %v4072_v20 = vsel %vm568_vm12, %v663_v18, %v4016_v30  ;;  %v664_v24 = vsel %vm568_vm12, %v663_v18, 0.0 }
 0x5d3   :  { %850 = vrot.lane.b32.xlu1 %v4072_v20, %s3759_s22  ;;  %743 = vrot.lane.b32.xlu0 %v664_v24, %s3759_s22 }
 0x63f   :  { %v4079_v25 = vpop.permute.xlu1 %668 }
 0x640   :  { %3054 = vmatmul.mubr.msk.f32.vlgmr.msra.gmra.mrb[16].mxu1 %vm150_vm1, %v4079_v25 }
 0x641   :  { %3305 = vmatpush3.bf16.msra.mxu1 %v3992_v19  ;;  %3064 = vmatprep.mubr.msk.f32.mxu1 %vm3756_vm0, %v3757_v22 }
 0x642   :  { %3306 = vmatprep.subr.bf16.mxu1 %v3755_v15 }
 0x645   :  { %3308 = vmatpush3.bf16.msra.mxu1 %v4004_v26  ;;  %v851_v28 = vpop.permute.xlu1 %850  ;;  %v744_v29 = vpop.permute.xlu0 %743 }
 0x646   :  { %3076 = vmatmul.mubr.msk.f32.vlgmr.msra.gmra.mrb[0].mxu0 %vm150_vm1, %v851_v28  ;;  %3315 = vmatprep.subr.bf16.mxu1 %v3755_v15 }
 0x647   :  { %3323 = vmatpush3.bf16.msra.mxu0 %v3992_v19  ;;  %3097 = vmatprep.mubr.msk.f32.mxu0 %vm3756_vm0, %v3757_v22 }
 0x648   :  { %3065 = vmatmul.mubr.msk.f32.vlgmr.msra.gmra.mrb[18].mxu1 %vm150_vm1, %v744_v29  ;;  %3324 = vmatprep.subr.bf16.mxu0 %v3755_v15 }
 0x649   :  { %3317 = vmatpush3.bf16.msra.mxu1 %v3979_v12  ;;  %3086 = vmatprep.mubr.msk.f32.mxu1 %vm3756_vm0, %v3757_v22 }
 0x64a   :  { %3318 = vmatprep.subr.bf16.mxu1 %v3755_v15 }
 0x64b   :  { %3326 = vmatpush3.bf16.msra.mxu0 %v4004_v26 }
 0x64c   :  { %3333 = vmatprep.subr.bf16.mxu0 %v3755_v15 }
 0x64d   :  { %3320 = vmatpush3.bf16.msra.mxu1 %v3982_v14 }
 0x64e   :  { %3327 = vmatprep.subr.bf16.mxu1 %v3755_v15 }
 0x713   :  { %v738_v30 = vpop.f32.mrb[16].mxu1 }
 0x714   :  { %v3055_v31 = vpop.f32.mrb[17].mxu1 }
 0x719   :  { %v920_v32 = vpop.f32.mrb[0].mxu0 }
 0x71a   :  { %v924_v33 = vadd.f32 %v920_v32, %v3957_v48  ;;  %v3077_v35 = vpop.f32.mrb[1].mxu0 }
 0x71b   :  { %v813_v36 = vpop.f32.mrb[18].mxu1 }
 0x71c   :  { %3547 = vtanh.f32 %v924_v33  ;;  %v814_v37 = vadd.f32 %v813_v36, %v738_v30  ;;  %v3066_v38 = vpop.f32.mrb[19].mxu1  ;;  %v2820_v44 = vmul.f32 -1.442695, %v924_v33 }
 0x71e   :  { %v817_v39 = vadd.f32 %v4037_v34, %v814_v37 }
 0x720   :  { %3549 = vtanh.f32 %v817_v39  ;;  %v2818_v45 = vmul.f32 -1.442695, %v817_v39  ;;  %v3762_v39 = vmov 3  }
 0x721   :  { %3551 = vpow2.f32 %v2820_v44  ;;  %3507 = vset.pattern.permute.xlu1 %v3762_v39  ;;  %v3763_v39 = vmov 4  }
 0x722   :  { %3553 = vpow2.f32 %v2818_v45 }
 0x726   :  { %v3548_v41 = vpop.eup %3547 }
 0x727   :  { %934 = vrot.lane.b32.xlu1 %v3548_v41, %s3758_s6 }
 0x72a   :  { %v3550_v42 = vpop.eup %3549 }
 0x72b   :  { %827 = vrot.lane.b32.xlu0 %v3550_v42, %s3758_s6  ;;  %v3552_v48 = vpop.eup %3551 }
 0x72c   :  { %v928_v47 = vadd.f32 1.0, %v3552_v48  ;;  %v3554_v49 = vpop.eup %3553 }
 0x72d   :  { %v821_v51 = vadd.f32 1.0, %v3554_v49 }
 0x72e   :  { %3555 = vrcp.f32 %v928_v47 }
 0x72f   :  { %3557 = vrcp.f32 %v821_v51 }
 0x738   :  { %v3556_v53 = vpop.eup %3555 }
 0x739   :  { %v3558_v43 = vpop.eup %3557  ;;  %v932_v5 = vmul.f32 %v3556_v53, %v4120_v62 }
 0x73a   :  { %v825_v61 = vmul.f32 %v3558_v43, %v4113_v60 }
 0x799   :  { %v935_v55 = vpop.permute.xlu1 %934 }
 0x79a   :  { %v937_v57 = vmul.f32 %v3556_v53, %v935_v55 }
 0x79c   :  { %939 = vrot.lane.b32.xlu1 %v937_v57, %s3759_s22 }
 0x79d   :  { %v828_v58 = vpop.permute.xlu0 %827 }
 0x79e   :  { %v830_v59 = vmul.f32 %v3558_v43, %v828_v58 }
 0x7a0   :  { %832 = vrot.lane.b32.xlu0 %v830_v59, %s3759_s22 }
 0x7a4   :  { %846 = vperm.xlu0 %3506, %v3972_v63  }
 0x80e   :  { %v940_v1 = vpop.permute.xlu1 %939 }
 0x80f   :  { %v4125_v8 = vadd.f32 %v940_v1, %v932_v5 }
 0x812   :  { %v833_v2 = vpop.permute.xlu0 %832 }
 0x813   :  { %v4123_v6 = vadd.f32 %v833_v2, %v825_v61 }
 0x815   :  { %3559 = vtanh.f32 %v4123_v6  ;;  %v4186_v58 = vsel %vm568_vm12, %v4123_v6, %v4113_v60 }
 0x816   :  { %3561 = vtanh.f32 %v4125_v8 }
 0x81f   :  { %v3560_v27 = vpop.eup %3559 }
 0x820   :  { %838 = vrot.lane.b32.xlu1 %v3560_v27, %s3758_s6  ;;  %v3562_v3 = vpop.eup %3561 }
 0x823   :  { %v4133_v0 = vpop.permute.xlu0 %846 }
 0x824   :  { %945 = vrot.lane.b32.xlu1 %v3562_v3, %s3758_s6  ;;  %vm848_vm13 = vcmp.eq.s32.totalorder %v4133_v0, 1 }
 0x825   :  { %v4195_v2 = vsel %vm848_vm13, %v4125_v8, %v4120_v62 }
 0x892   :  { %v839_v4 = vpop.permute.xlu1 %838 }
 0x893   :  { %v4131_v7 = vmul.f32 %v3558_v43, %v839_v4 }
 0x895   :  { %v4139_v10 = vsel %vm568_vm12, %v4131_v7, %v4062_v13 }
 0x896   :  { %953 = vrot.lane.b32.xlu0 %v4139_v10, %s3759_s22  ;;  %v946_v11 = vpop.permute.xlu1 %945 }
 0x897   :  { %v948_v17 = vmul.f32 %v3556_v53, %v946_v11 }
 0x899   :  { %v4147_v18 = vsel %vm848_vm13, %v948_v17, %v4072_v20  ;;  %v949_v24 = vsel %vm848_vm13, %v948_v17, 0.0 }
 0x89a   :  { %1135 = vrot.lane.b32.xlu0 %v4147_v18, %s3759_s22  ;;  %1028 = vrot.lane.b32.xlu1 %v949_v24, %s3759_s22 }
 0x908   :  { %v954_v13 = vpop.permute.xlu0 %953 }
 0x909   :  { %3087 = vmatmul.mubr.msk.f32.vlgmr.msra.gmra.mrb[20].mxu1 %vm150_vm1, %v954_v13 }
 0x90a   :  { %3329 = vmatpush3.bf16.msra.mxu1 %v3901_v16  ;;  %3108 = vmatprep.mubr.msk.f32.mxu1 %vm3756_vm0, %v3757_v22 }
 0x90b   :  { %3330 = vmatprep.subr.bf16.mxu1 %v3755_v15 }
 0x90c   :  { %v1029_v20 = vpop.permute.xlu1 %1028  ;;  %v1136_v28 = vpop.permute.xlu0 %1135 }
 0x90d   :  { %3098 = vmatmul.mubr.msk.f32.vlgmr.msra.gmra.mrb[2].mxu0 %vm150_vm1, %v1029_v20 }
 0x90e   :  { %3332 = vmatpush3.bf16.msra.mxu1 %v3918_v21  ;;  %3335 = vmatpush3.bf16.msra.mxu0 %v3979_v12 }
 0x90f   :  { %3339 = vmatprep.subr.bf16.mxu1 %v3755_v15  ;;  %3336 = vmatprep.subr.bf16.mxu0 %v3755_v15 }
 0x910   :  { %3119 = vmatprep.mubr.msk.f32.mxu0 %vm3756_vm0, %v3757_v22 }
 0x911   :  { %3109 = vmatmul.mubr.msk.f32.vlgmr.msra.gmra.mrb[22].mxu1 %vm150_vm1, %v1136_v28 }
 0x912   :  { %3341 = vmatpush3.bf16.msra.mxu1 %v3992_v19  ;;  %3338 = vmatpush3.bf16.msra.mxu0 %v3982_v14 }
 0x913   :  { %3342 = vmatprep.subr.bf16.mxu1 %v3755_v15  ;;  %3345 = vmatprep.subr.bf16.mxu0 %v3755_v15 }
 0x914   :  { %3130 = vmatprep.mubr.msk.f32.mxu1 %vm3756_vm0, %v3757_v22 }
 0x916   :  { %3344 = vmatpush3.bf16.msra.mxu1 %v4004_v26 }
 0x917   :  { %3351 = vmatprep.subr.bf16.mxu1 %v3755_v15 }
 0x9dc   :  { %v1023_v29 = vpop.f32.mrb[20].mxu1 }
 0x9dd   :  { %v3088_v30 = vpop.f32.mrb[21].mxu1 }
 0x9e0   :  { %v1098_v31 = vpop.f32.mrb[2].mxu0 }
 0x9e1   :  { %v1099_v32 = vadd.f32 %v1098_v31, %v1023_v29  ;;  %v3099_v33 = vpop.f32.mrb[3].mxu0 }
 0x9e3   :  { %v1102_v35 = vadd.f32 %v4037_v34, %v1099_v32 }
 0x9e4   :  { %v1205_v36 = vpop.f32.mrb[22].mxu1 }
 0x9e5   :  { %3563 = vtanh.f32 %v1102_v35  ;;  %v1209_v37 = vadd.f32 %v1205_v36, %v3955_v46  ;;  %v3110_v38 = vpop.f32.mrb[23].mxu1  ;;  %v2823_v42 = vmul.f32 -1.442695, %v1102_v35 }
 0x9e7   :  { %3565 = vtanh.f32 %v1209_v37  ;;  %v2825_v44 = vmul.f32 -1.442695, %v1209_v37 }
 0x9e8   :  { %3567 = vpow2.f32 %v2823_v42 }
 0x9e9   :  { %3569 = vpow2.f32 %v2825_v44 }
 0x9ef   :  { %v3564_v40 = vpop.eup %3563 }
 0x9f0   :  { %1112 = vrot.lane.b32.xlu1 %v3564_v40, %s3758_s6 }
 0x9f1   :  { %v3566_v41 = vpop.eup %3565 }
 0x9f2   :  { %1219 = vrot.lane.b32.xlu0 %v3566_v41, %s3758_s6  ;;  %v3568_v45 = vpop.eup %3567 }
 0x9f3   :  { %v3570_v48 = vpop.eup %3569  ;;  %v1106_v47 = vadd.f32 1.0, %v3568_v45 }
 0x9f4   :  { %v1213_v49 = vadd.f32 1.0, %v3570_v48 }
 0x9f5   :  { %3571 = vrcp.f32 %v1106_v47 }
 0x9f6   :  { %3573 = vrcp.f32 %v1213_v49 }
 0x9ff   :  { %v3572_v46 = vpop.eup %3571 }
 0xa00   :  { %v3574_v55 = vpop.eup %3573  ;;  %v1110_v59 = vmul.f32 %v3572_v46, %v4186_v58 }
 0xa01   :  { %v1217_v5 = vmul.f32 %v3574_v55, %v4195_v2 }
 0xa62   :  { %v1113_v51 = vpop.permute.xlu1 %1112 }
 0xa63   :  { %v1115_v53 = vmul.f32 %v3572_v46, %v1113_v51 }
 0xa64   :  { %v1220_v57 = vpop.permute.xlu0 %1219 }
 0xa65   :  { %1117 = vrot.lane.b32.xlu1 %v1115_v53, %s3759_s22  ;;  %v1222_v43 = vmul.f32 %v3574_v55, %v1220_v57 }
 0xa67   :  { %1224 = vrot.lane.b32.xlu0 %v1222_v43, %s3759_s22 }
 0xa69   :  { %1131 = vperm.xlu1 %3507, %v3972_v63  }
 0xa6d   :  { %3508 = vset.pattern.permute.xlu1 %v3763_v39 }
 0xad7   :  { %v1118_v61 = vpop.permute.xlu1 %1117 }
 0xad8   :  { %v4189_v1 = vadd.f32 %v1118_v61, %v1110_v59 }
 0xad9   :  { %v1225_v27 = vpop.permute.xlu0 %1224 }
 0xada   :  { %3575 = vtanh.f32 %v4189_v1  ;;  %v4199_v3 = vadd.f32 %v1225_v27, %v1217_v5  ;;  %v4259_v43 = vsel %vm848_vm13, %v4189_v1, %v4186_v58 }
 0xadc   :  { %3577 = vtanh.f32 %v4199_v3 }
 0xae4   :  { %v3576_v60 = vpop.eup %3575 }
 0xae5   :  { %1123 = vrot.lane.b32.xlu0 %v3576_v60, %s3758_s6 }
 0xae6   :  { %v3578_v6 = vpop.eup %3577 }
 0xae7   :  { %1230 = vrot.lane.b32.xlu1 %v3578_v6, %s3758_s6 }
 0xae8   :  { %v4204_v4 = vpop.permute.xlu1 %1131 }
 0xae9   :  { %vm1133_vm14 = vcmp.eq.s32.totalorder %v4204_v4, 1 }
 0xaea   :  { %v4268_v27 = vsel %vm1133_vm14, %v4199_v3, %v4195_v2 }
 0xb57   :  { %v1124_v11 = vpop.permute.xlu0 %1123 }
 0xb58   :  { %v4206_v62 = vmul.f32 %v3572_v46, %v1124_v11 }
 0xb59   :  { %v1231_v8 = vpop.permute.xlu1 %1230 }
 0xb5a   :  { %v4212_v17 = vsel %vm848_vm13, %v4206_v62, %v4139_v10  ;;  %v1233_v24 = vmul.f32 %v3574_v55, %v1231_v8 }
 0xb5b   :  { %1238 = vrot.lane.b32.xlu0 %v4212_v17, %s3759_s22 }
 0xb5c   :  { %v1234_v13 = vsel %vm1133_vm14, %v1233_v24, 0.0  ;;  %v4223_v20 = vsel %vm1133_vm14, %v1233_v24, %v4147_v18 }
 0xb5d   :  { %1313 = vrot.lane.b32.xlu1 %v1234_v13, %s3759_s22 }
 0xb5f   :  { %1420 = vrot.lane.b32.xlu0 %v4223_v20, %s3759_s22 }
 0xbcd   :  { %v1239_v10 = vpop.permute.xlu0 %1238 }
 0xbce   :  { %3120 = vmatmul.mubr.msk.f32.vlgmr.msra.gmra.mrb[4].mxu0 %vm150_vm1, %v1239_v10 }
 0xbcf   :  { %3347 = vmatpush3.bf16.msra.mxu0 %v3901_v16  ;;  %3141 = vmatprep.mubr.msk.f32.mxu0 %vm3756_vm0, %v3757_v22  ;;  %v1314_v28 = vpop.permute.xlu1 %1313 }
 0xbd0   :  { %3348 = vmatprep.subr.bf16.mxu0 %v3755_v15  ;;  %3131 = vmatmul.mubr.msk.f32.vlgmr.msra.gmra.mrb[24].mxu1 %vm150_vm1, %v1314_v28 }
 0xbd1   :  { %3353 = vmatpush3.bf16.msra.mxu1 %v3979_v12  ;;  %3152 = vmatprep.mubr.msk.f32.mxu1 %vm3756_vm0, %v3757_v22  ;;  %v1421_v18 = vpop.permute.xlu0 %1420 }
 0xbd2   :  { %3354 = vmatprep.subr.bf16.mxu1 %v3755_v15 }
 0xbd3   :  { %3350 = vmatpush3.bf16.msra.mxu0 %v3918_v21 }
 0xbd4   :  { %3357 = vmatprep.subr.bf16.mxu0 %v3755_v15 }
 0xbd5   :  { %3356 = vmatpush3.bf16.msra.mxu1 %v3982_v14 }
 0xbd6   :  { %3142 = vmatmul.mubr.msk.f32.vlgmr.msra.gmra.mrb[6].mxu0 %vm150_vm1, %v1421_v18  ;;  %3363 = vmatprep.subr.bf16.mxu1 %v3755_v15 }
 0xbd7   :  { %3359 = vmatpush3.bf16.msra.mxu0 %v3992_v19  ;;  %3163 = vmatprep.mubr.msk.f32.mxu0 %vm3756_vm0, %v3757_v22 }
 0xbd8   :  { %3360 = vmatprep.subr.bf16.mxu0 %v3755_v15 }
 0xbdb   :  { %3362 = vmatpush3.bf16.msra.mxu0 %v4004_v26 }
 0xbdc   :  { %3369 = vmatprep.subr.bf16.mxu0 %v3755_v15 }
 0xca1   :  { %v1308_v29 = vpop.f32.mrb[4].mxu0 }
 0xca2   :  { %v3121_v30 = vpop.f32.mrb[5].mxu0 }
 0xca3   :  { %v1383_v31 = vpop.f32.mrb[24].mxu1 }
 0xca4   :  { %v1384_v32 = vadd.f32 %v1383_v31, %v1308_v29  ;;  %v3132_v33 = vpop.f32.mrb[25].mxu1 }
 0xca6   :  { %v1387_v35 = vadd.f32 %v4037_v34, %v1384_v32 }
 0xca8   :  { %3579 = vtanh.f32 %v1387_v35  ;;  %v2828_v42 = vmul.f32 -1.442695, %v1387_v35 }
 0xca9   :  { %v1490_v36 = vpop.f32.mrb[6].mxu0 }
 0xcaa   :  { %v1494_v37 = vadd.f32 %v1490_v36, %v3961_v52  ;;  %v3143_v38 = vpop.f32.mrb[7].mxu0 }
 0xcac   :  { %3581 = vtanh.f32 %v1494_v37  ;;  %v2830_v44 = vmul.f32 -1.442695, %v1494_v37 }
 0xcad   :  { %3583 = vpow2.f32 %v2828_v42 }
 0xcae   :  { %3585 = vpow2.f32 %v2830_v44 }
 0xcb2   :  { %v3580_v40 = vpop.eup %3579 }
 0xcb3   :  { %1397 = vrot.lane.b32.xlu1 %v3580_v40, %s3758_s6  ;;  %v3764_v40 = vmov 5  }
 0xcb6   :  { %v3582_v41 = vpop.eup %3581 }
 0xcb7   :  { %1504 = vrot.lane.b32.xlu0 %v3582_v41, %s3758_s6  ;;  %v3584_v45 = vpop.eup %3583 }
 0xcb8   :  { %v3586_v48 = vpop.eup %3585  ;;  %v1391_v47 = vadd.f32 1.0, %v3584_v45 }
 0xcb9   :  { %v1498_v49 = vadd.f32 1.0, %v3586_v48 }
 0xcba   :  { %3587 = vrcp.f32 %v1391_v47 }
 0xcbb   :  { %3589 = vrcp.f32 %v1498_v49 }
 0xcc4   :  { %v3588_v52 = vpop.eup %3587 }
 0xcc5   :  { %v3590_v53 = vpop.eup %3589  ;;  %v1395_v59 = vmul.f32 %v3588_v52, %v4259_v43 }
 0xcc6   :  { %v1502_v60 = vmul.f32 %v3590_v53, %v4268_v27 }
 0xd25   :  { %v1398_v46 = vpop.permute.xlu1 %1397 }
 0xd26   :  { %v1400_v51 = vmul.f32 %v3588_v52, %v1398_v46 }
 0xd28   :  { %1402 = vrot.lane.b32.xlu1 %v1400_v51, %s3759_s22 }
 0xd29   :  { %v1505_v55 = vpop.permute.xlu0 %1504 }
 0xd2a   :  { %v1507_v57 = vmul.f32 %v3590_v53, %v1505_v55 }
 0xd2c   :  { %1509 = vrot.lane.b32.xlu0 %v1507_v57, %s3759_s22  ;;  %1416 = vperm.xlu1 %3508, %v3972_v63  }
 0xd30   :  { %3509 = vset.pattern.permute.xlu1 %v3764_v40 }
 0xd9a   :  { %v1403_v61 = vpop.permute.xlu1 %1402 }
 0xd9b   :  { %v4262_v5 = vadd.f32 %v1403_v61, %v1395_v59 }
 0xd9d   :  { %3591 = vtanh.f32 %v4262_v5  ;;  %v4332_v59 = vsel %vm1133_vm14, %v4262_v5, %v4259_v43 }
 0xd9e   :  { %v1510_v6 = vpop.permute.xlu0 %1509 }
 0xd9f   :  { %v4272_v11 = vadd.f32 %v1510_v6, %v1502_v60 }
 0xda1   :  { %3593 = vtanh.f32 %v4272_v11 }
 0xda7   :  { %v3592_v58 = vpop.eup %3591 }
 0xda8   :  { %1408 = vrot.lane.b32.xlu0 %v3592_v58, %s3758_s6 }
 0xdab   :  { %v3594_v1 = vpop.eup %3593  ;;  %v4277_v8 = vpop.permute.xlu1 %1416 }
 0xdac   :  { %1515 = vrot.lane.b32.xlu1 %v3594_v1, %s3758_s6  ;;  %vm1418_vm15 = vcmp.eq.s32.totalorder %v4277_v8, 1  ;;  %v2595_v8 = vld [vmem:[#allocation5 + $0x58] sm:$0xff] }
 0xdad   :  { %v4341_v58 = vsel %vm1418_vm15, %v4272_v11, %v4268_v27 }
 0xe1a   :  { %v1409_v24 = vpop.permute.xlu0 %1408 }
 0xe1b   :  { %v4279_v2 = vmul.f32 %v3588_v52, %v1409_v24 }
 0xe1d   :  { %v4285_v13 = vsel %vm1133_vm14, %v4279_v2, %v4212_v17 }
 0xe1e   :  { %v1516_v3 = vpop.permute.xlu1 %1515  ;;  %1523 = vrot.lane.b32.xlu0 %v4285_v13, %s3759_s22 }
 0xe1f   :  { %v1518_v10 = vmul.f32 %v3590_v53, %v1516_v3 }
 0xe21   :  { %v1519_v28 = vsel %vm1418_vm15, %v1518_v10, 0.0  ;;  %v4295_v18 = vsel %vm1418_vm15, %v1518_v10, %v4223_v20 }
 0xe22   :  { %1598 = vrot.lane.b32.xlu1 %v1519_v28, %s3759_s22  ;;  %1705 = vrot.lane.b32.xlu0 %v4295_v18, %s3759_s22 }
 0xe90   :  { %v1524_v17 = vpop.permute.xlu0 %1523 }
 0xe91   :  { %3153 = vmatmul.mubr.msk.f32.vlgmr.msra.gmra.mrb[26].mxu1 %vm150_vm1, %v1524_v17 }
 0xe92   :  { %3365 = vmatpush3.bf16.msra.mxu1 %v3901_v16  ;;  %3174 = vmatprep.mubr.msk.f32.mxu1 %vm3756_vm0, %v3757_v22 }
 0xe93   :  { %3366 = vmatprep.subr.bf16.mxu1 %v3755_v15 }
 0xe94   :  { %v1599_v29 = vpop.permute.xlu1 %1598  ;;  %v1706_v20 = vpop.permute.xlu0 %1705 }
 0xe95   :  { %3164 = vmatmul.mubr.msk.f32.vlgmr.msra.gmra.mrb[8].mxu0 %vm150_vm1, %v1599_v29 }
 0xe96   :  { %3371 = vmatpush3.bf16.msra.mxu0 %v3979_v12  ;;  %3185 = vmatprep.mubr.msk.f32.mxu0 %vm3756_vm0, %v3757_v22 }
 0xe97   :  { %3368 = vmatpush3.bf16.msra.mxu1 %v3918_v21  ;;  %3372 = vmatprep.subr.bf16.mxu0 %v3755_v15 }
 0xe98   :  { %3375 = vmatprep.subr.bf16.mxu1 %v3755_v15 }
 0xe9a   :  { %3175 = vmatmul.mubr.msk.f32.vlgmr.msra.gmra.mrb[28].mxu1 %vm150_vm1, %v1706_v20  ;;  %3374 = vmatpush3.bf16.msra.mxu0 %v3982_v14 }
 0xe9b   :  { %3377 = vmatpush3.bf16.msra.mxu1 %v3992_v19  ;;  %3381 = vmatprep.subr.bf16.mxu0 %v3755_v15 }
 0xe9c   :  { %3378 = vmatprep.subr.bf16.mxu1 %v3755_v15  ;;  %3196 = vmatprep.mubr.msk.f32.mxu1 %vm3756_vm0, %v3757_v22 }
 0xe9f   :  { %3380 = vmatpush3.bf16.msra.mxu1 %v4004_v26 }
 0xea0   :  { %3387 = vmatprep.subr.bf16.mxu1 %v3755_v15 }
 0xf64   :  { %v1593_v30 = vpop.f32.mrb[26].mxu1 }
 0xf65   :  { %v3154_v31 = vpop.f32.mrb[27].mxu1 }
 0xf68   :  { %v1668_v32 = vpop.f32.mrb[8].mxu0 }
 0xf69   :  { %v1669_v33 = vadd.f32 %v1668_v32, %v1593_v30  ;;  %v3165_v35 = vpop.f32.mrb[9].mxu0 }
 0xf6b   :  { %v1672_v36 = vadd.f32 %v4037_v34, %v1669_v33 }
 0xf6d   :  { %3595 = vtanh.f32 %v1672_v36  ;;  %v1775_v37 = vpop.f32.mrb[28].mxu1  ;;  %v2833_v44 = vmul.f32 -1.442695, %v1672_v36 }
 0xf6e   :  { %v1779_v38 = vadd.f32 %v1775_v37, %v3959_v50  ;;  %v3176_v39 = vpop.f32.mrb[29].mxu1 }
 0xf70   :  { %3597 = vtanh.f32 %v1779_v38  ;;  %v2835_v45 = vmul.f32 -1.442695, %v1779_v38 }
 0xf71   :  { %3599 = vpow2.f32 %v2833_v44 }
 0xf72   :  { %3601 = vpow2.f32 %v2835_v45 }
 0xf77   :  { %v3596_v41 = vpop.eup %3595 }
 0xf78   :  { %1682 = vrot.lane.b32.xlu1 %v3596_v41, %s3758_s6 }
 0xf7a   :  { %v3598_v42 = vpop.eup %3597 }
 0xf7b   :  { %1789 = vrot.lane.b32.xlu0 %v3598_v42, %s3758_s6  ;;  %v3600_v48 = vpop.eup %3599  ;;  %v3765_v42 = vmov 6  }
 0xf7c   :  { %v3602_v47 = vpop.eup %3601  ;;  %v1676_v49 = vadd.f32 1.0, %v3600_v48 }
 0xf7d   :  { %v1783_v52 = vadd.f32 1.0, %v3602_v47 }
 0xf7e   :  { %3603 = vrcp.f32 %v1676_v49 }
 0xf7f   :  { %3605 = vrcp.f32 %v1783_v52 }
 0xf88   :  { %v3604_v50 = vpop.eup %3603 }
 0xf89   :  { %v3606_v53 = vpop.eup %3605  ;;  %v1680_v61 = vmul.f32 %v3604_v50, %v4332_v59 }
 0xf8a   :  { %v1787_v1 = vmul.f32 %v3606_v53, %v4341_v58 }
 0xfea   :  { %v1683_v46 = vpop.permute.xlu1 %1682 }
 0xfeb   :  { %v1685_v51 = vmul.f32 %v3604_v50, %v1683_v46 }
 0xfed   :  { %v1790_v55 = vpop.permute.xlu0 %1789  ;;  %1687 = vrot.lane.b32.xlu1 %v1685_v51, %s3759_s22 }
 0xfee   :  { %v1792_v57 = vmul.f32 %v3606_v53, %v1790_v55 }
 0xff0   :  { %1794 = vrot.lane.b32.xlu0 %v1792_v57, %s3759_s22 }
 0xff1   :  { %1701 = vperm.xlu1 %3509, %v3972_v63  }
 0xff5   :  { %3510 = vset.pattern.permute.xlu1 %v3765_v42 }
0x105f   :  { %v1688_v60 = vpop.permute.xlu1 %1687 }
0x1060   :  { %v4335_v6 = vadd.f32 %v1688_v60, %v1680_v61 }
0x1062   :  { %3607 = vtanh.f32 %v4335_v6  ;;  %v1795_v24 = vpop.permute.xlu0 %1794  ;;  %v4405_v60 = vsel %vm1418_vm15, %v4335_v6, %v4332_v59 }
0x1063   :  { %v4345_v3 = vadd.f32 %v1795_v24, %v1787_v1 }
0x1065   :  { %3609 = vtanh.f32 %v4345_v3 }
0x106c   :  { %v3608_v43 = vpop.eup %3607 }
0x106d   :  { %1693 = vrot.lane.b32.xlu0 %v3608_v43, %s3758_s6 }
0x106f   :  { %v3610_v5 = vpop.eup %3609 }
0x1070   :  { %1800 = vrot.lane.b32.xlu1 %v3610_v5, %s3758_s6  ;;  %v4350_v10 = vpop.permute.xlu1 %1701 }
0x1071   :  { %vm1703_vm2 = vcmp.eq.s32.totalorder %v4350_v10, 1 }
0x1072   :  { %v4414_v5 = vsel %vm1703_vm2, %v4345_v3, %v4341_v58  ;;  %v4428_v3 = vsel %vm568_vm12, %v4131_v7, 0.0 }
0x10df   :  { %v1694_v28 = vpop.permute.xlu0 %1693 }
0x10e0   :  { %v4352_v27 = vmul.f32 %v3604_v50, %v1694_v28 }
0x10e2   :  { %v1801_v11 = vpop.permute.xlu1 %1800  ;;  %v4358_v17 = vsel %vm1418_vm15, %v4352_v27, %v4285_v13 }
0x10e3   :  { %v1803_v29 = vmul.f32 %v3606_v53, %v1801_v11  ;;  %1808 = vrot.lane.b32.xlu0 %v4358_v17, %s3759_s22 }
0x10e5   :  { %v1804_v20 = vsel %vm1703_vm2, %v1803_v29, 0.0  ;;  %v4369_v30 = vsel %vm1703_vm2, %v1803_v29, %v4295_v18 }
0x10e6   :  { %1883 = vrot.lane.b32.xlu1 %v1804_v20, %s3759_s22 }
0x10e7   :  { %1990 = vrot.lane.b32.xlu0 %v4369_v30, %s3759_s22 }
0x1155   :  { %v1809_v13 = vpop.permute.xlu0 %1808 }
0x1156   :  { %3186 = vmatmul.mubr.msk.f32.vlgmr.msra.gmra.mrb[10].mxu0 %vm150_vm1, %v1809_v13 }
0x1157   :  { %3383 = vmatpush3.bf16.msra.mxu0 %v3901_v16  ;;  %3207 = vmatprep.mubr.msk.f32.mxu0 %vm3756_vm0, %v3757_v22 }
0x1158   :  { %v1884_v31 = vpop.permute.xlu1 %1883  ;;  %3384 = vmatprep.subr.bf16.mxu0 %v3755_v15 }
0x1159   :  { %3197 = vmatmul.mubr.msk.f32.vlgmr.msra.gmra.mrb[30].mxu1 %vm150_vm1, %v1884_v31  ;;  %v1991_v18 = vpop.permute.xlu0 %1990 }
0x115a   :  { %3389 = vmatpush3.bf16.msra.mxu1 %v3979_v12  ;;  %3218 = vmatprep.mubr.msk.f32.mxu1 %vm3756_vm0, %v3757_v22 }
0x115b   :  { %3386 = vmatpush3.bf16.msra.mxu0 %v3918_v21  ;;  %3390 = vmatprep.subr.bf16.mxu1 %v3755_v15 }
0x115c   :  { %3393 = vmatprep.subr.bf16.mxu0 %v3755_v15 }
0x115e   :  { %3208 = vmatmul.mubr.msk.f32.vlgmr.msra.gmra.mrb[12].mxu0 %vm150_vm1, %v1991_v18  ;;  %3392 = vmatpush3.bf16.msra.mxu1 %v3982_v14 }
0x115f   :  { %3395 = vmatpush3.bf16.msra.mxu0 %v3992_v19  ;;  %3399 = vmatprep.subr.bf16.mxu1 %v3755_v15 }
0x1160   :  { %3396 = vmatprep.subr.bf16.mxu0 %v3755_v15  ;;  %3229 = vmatprep.mubr.msk.f32.mxu0 %vm3756_vm0, %v3757_v22 }
0x1163   :  { %3398 = vmatpush3.bf16.msra.mxu0 %v4004_v26 }
0x1164   :  { %3405 = vmatprep.subr.bf16.mxu0 %v3755_v15 }
0x1229   :  { %v1878_v32 = vpop.f32.mrb[10].mxu0 }
0x122a   :  { %v3187_v33 = vpop.f32.mrb[11].mxu0 }
0x122c   :  { %v1953_v35 = vpop.f32.mrb[30].mxu1 }
0x122d   :  { %v1954_v36 = vadd.f32 %v1953_v35, %v1878_v32  ;;  %v3198_v37 = vpop.f32.mrb[31].mxu1 }
0x122f   :  { %v1957_v38 = vadd.f32 %v4037_v34, %v1954_v36 }
0x1231   :  { %3611 = vtanh.f32 %v1957_v38  ;;  %v2060_v39 = vpop.f32.mrb[12].mxu0  ;;  %v2838_v48 = vmul.f32 -1.442695, %v1957_v38 }
0x1232   :  { %v2064_v40 = vadd.f32 %v2060_v39, %v3965_v56  ;;  %v3209_v41 = vpop.f32.mrb[13].mxu0 }
0x1234   :  { %3613 = vtanh.f32 %v2064_v40  ;;  %v2840_v47 = vmul.f32 -1.442695, %v2064_v40 }
0x1235   :  { %3615 = vpow2.f32 %v2838_v48 }
0x1236   :  { %3617 = vpow2.f32 %v2840_v47 }
0x123b   :  { %v3612_v44 = vpop.eup %3611 }
0x123c   :  { %1967 = vrot.lane.b32.xlu1 %v3612_v44, %s3758_s6 }
0x123e   :  { %v3614_v45 = vpop.eup %3613 }
0x123f   :  { %2074 = vrot.lane.b32.xlu0 %v3614_v45, %s3758_s6  ;;  %v3616_v49 = vpop.eup %3615 }
0x1240   :  { %v3618_v52 = vpop.eup %3617  ;;  %v1961_v50 = vadd.f32 1.0, %v3616_v49 }
0x1241   :  { %v2068_v46 = vadd.f32 1.0, %v3618_v52 }
0x1242   :  { %3619 = vrcp.f32 %v1961_v50 }
0x1243   :  { %3621 = vrcp.f32 %v2068_v46 }
0x124c   :  { %v3620_v56 = vpop.eup %3619 }
0x124d   :  { %v3622_v55 = vpop.eup %3621  ;;  %v1965_v1 = vmul.f32 %v3620_v56, %v4405_v60 }
0x124e   :  { %v2072_v28 = vmul.f32 %v3622_v55, %v4414_v5 }
0x12ae   :  { %v1968_v51 = vpop.permute.xlu1 %1967 }
0x12af   :  { %v1970_v53 = vmul.f32 %v3620_v56, %v1968_v51 }
0x12b1   :  { %1972 = vrot.lane.b32.xlu1 %v1970_v53, %s3759_s22  ;;  %v2075_v57 = vpop.permute.xlu0 %2074 }
0x12b2   :  { %v2077_v61 = vmul.f32 %v3622_v55, %v2075_v57 }
0x12b4   :  { %2079 = vrot.lane.b32.xlu0 %v2077_v61, %s3759_s22 }
0x12b5   :  { %1986 = vperm.xlu1 %3510, %v3972_v63  }
0x1323   :  { %v1973_v24 = vpop.permute.xlu1 %1972 }
0x1324   :  { %v4408_v43 = vadd.f32 %v1973_v24, %v1965_v1 }
0x1326   :  { %3623 = vtanh.f32 %v4408_v43  ;;  %v2080_v11 = vpop.permute.xlu0 %2079 }
0x1327   :  { %v4418_v29 = vadd.f32 %v2080_v11, %v2072_v28  ;;  %v1129_v28 = vsel %vm848_vm13, %v4206_v62, 0.0 }
0x1329   :  { %3625 = vtanh.f32 %v4418_v29 }
0x1330   :  { %v3624_v59 = vpop.eup %3623 }
0x1331   :  { %1978 = vrot.lane.b32.xlu0 %v3624_v59, %s3758_s6 }
0x1333   :  { %v3626_v6 = vpop.eup %3625 }
0x1334   :  { %2085 = vrot.lane.b32.xlu1 %v3626_v6, %s3758_s6  ;;  %v4423_v20 = vpop.permute.xlu1 %1986 }
0x1335   :  { %vm1988_vm3 = vcmp.eq.s32.totalorder %v4423_v20, 1 }
0x1336   :  { %v4493_v57 = vsel %vm1988_vm3, %v4418_v29, %v4414_v5 }
0x13a3   :  { %v1979_v13 = vpop.permute.xlu0 %1978 }
0x13a4   :  { %v1981_v58 = vmul.f32 %v3620_v56, %v1979_v13  ;;  %v4484_v56 = vsel %vm1703_vm2, %v4408_v43, %v4405_v60 }
0x13a6   :  { %v4432_v31 = vsel %vm1703_vm2, %v1981_v58, 0.0  ;;  %v2086_v18 = vpop.permute.xlu1 %2085  ;;  %v4437_v32 = vsel %vm1703_vm2, %v1981_v58, %v4358_v17 }
0x13a7   :  { %v3512_v33 = vpack.i.bf16 %v4428_v3, %v4432_v31  ;;  %v2088_v35 = vmul.f32 %v3622_v55, %v2086_v18  ;;  %2093 = vrot.lane.b32.xlu0 %v4437_v32, %s3759_s22 }
0x13a9   :  { %v2089_v9 = vsel %vm1988_vm3, %v2088_v35, 0.0  ;;  %v4449_v7 = vsel %vm1988_vm3, %v2088_v35, %v4369_v30 }
0x13aa   :  { %2168 = vrot.lane.b32.xlu1 %v2089_v9, %s3759_s22 }
0x13ab   :  { %2275 = vrot.lane.b32.xlu0 %v4449_v7, %s3759_s22 }
0x1419   :  { %v2094_v17 = vpop.permute.xlu0 %2093 }
0x141a   :  { %3219 = vmatmul.mubr.msk.f32.vlgmr.msra.gmra.mrb[32].mxu1 %vm150_vm1, %v2094_v17 }
0x141b   :  { %3401 = vmatpush3.bf16.msra.mxu1 %v3901_v16  ;;  %3240 = vmatprep.mubr.msk.f32.mxu1 %vm3756_vm0, %v3757_v22 }
0x141c   :  { %v2169_v36 = vpop.permute.xlu1 %2168  ;;  %3402 = vmatprep.subr.bf16.mxu1 %v3755_v15 }
0x141d   :  { %3230 = vmatmul.mubr.msk.f32.vlgmr.msra.gmra.mrb[14].mxu0 %vm150_vm1, %v2169_v36  ;;  %v2276_v16 = vpop.permute.xlu0 %2275  ;;  %v3651_v36 = vld [vmem:[%s4625_s7] ss:$0 sm:$0xff]  ;;  %s3767_s7 = smov 96  }
0x141e   :  { %3407 = vmatpush3.bf16.msra.mxu0 %v3979_v12  ;;  %3251 = vmatprep.mubr.msk.f32.mxu0 %vm3756_vm0, %v3757_v22 }
0x141f   :  { %3404 = vmatpush3.bf16.msra.mxu1 %v3918_v21  ;;  %3408 = vmatprep.subr.bf16.mxu0 %v3755_v15 }
0x1420   :  { %3411 = vmatprep.subr.bf16.mxu1 %v3755_v15 }
0x1422   :  { %3241 = vmatmul.mubr.msk.f32.vlgmr.msra.gmra.mrb[34].mxu1 %vm150_vm1, %v2276_v16  ;;  %3410 = vmatpush3.bf16.msra.mxu0 %v3982_v14 }
0x1423   :  { %3413 = vmatpush3.bf16.msra.mxu1 %v3992_v19  ;;  %3262 = vmatprep.mubr.msk.f32.mxu1 %vm3756_vm0, %v3757_v22  ;;  %v3766_v19 = vmov 7  }
0x1424   :  { %3414 = vmatprep.subr.bf16.mxu1 %v3755_v15  ;;  %3511 = vset.pattern.permute.xlu1 %v3766_v19 }
0x1425   :  { %3522 = vset.pattern.permute.xlu0 %v3766_v19  ;;  %v2587_v19 = vld [vmem:[#allocation5 + $0x18] sm:$0xff] }
0x1427   :  { %3416 = vmatpush3.bf16.msra.mxu1 %v4004_v26 }
0x14ed   :  { %v2163_v12 = vpop.f32.mrb[32].mxu1 }
0x14ee   :  { %v3220_v21 = vpop.f32.mrb[33].mxu1 }
0x14f0   :  { %v2238_v30 = vpop.f32.mrb[14].mxu0 }
0x14f1   :  { %v2239_v37 = vadd.f32 %v2238_v30, %v2163_v12  ;;  %v3231_v38 = vpop.f32.mrb[15].mxu0 }
0x14f3   :  { %v2242_v39 = vadd.f32 %v4037_v34, %v2239_v37 }
0x14f5   :  { %3627 = vtanh.f32 %v2242_v39  ;;  %v2345_v40 = vpop.f32.mrb[34].mxu1  ;;  %v2843_v26 = vmul.f32 -1.442695, %v2242_v39 }
0x14f6   :  { %v2349_v14 = vadd.f32 %v2345_v40, %v3963_v54  ;;  %v3242_v41 = vpop.f32.mrb[35].mxu1 }
0x14f7   :  { %v2585_v41 = vld [vmem:[#allocation5 + $0x8] sm:$0xff] }
0x14f8   :  { %3629 = vtanh.f32 %v2349_v14  ;;  %v2845_v42 = vmul.f32 -1.442695, %v2349_v14  ;;  %v1699_v14 = vsel %vm1418_vm15, %v4352_v27, 0.0 }
0x14f9   :  { %3631 = vpow2.f32 %v2843_v26  ;;  %v2586_v26 = vld [vmem:[#allocation5 + $0x10] sm:$0xff] }
0x14fa   :  { %3633 = vpow2.f32 %v2845_v42  ;;  %v2589_v42 = vld [vmem:[#allocation5 + $0x28] sm:$0xff] }
0x14ff   :  { %v3628_v22 = vpop.eup %3627 }
0x1500   :  { %2252 = vrot.lane.b32.xlu1 %v3628_v22, %s3758_s6  ;;  %v2584_v22 = vld [vmem:[#allocation5] sm:$0xff] }
0x1502   :  { %v3630_v15 = vpop.eup %3629 }
0x1503   :  { %2359 = vrot.lane.b32.xlu0 %v3630_v15, %s3758_s6  ;;  %v3632_v34 = vpop.eup %3631  ;;  %v3417_v15 = vpack.c.bf16 %v2587_v19, %v2585_v41  ;;  %v2617_v41 = vld [vmem:[#allocation5 + $0x108] sm:$0xff]  ;;  %v2619_v19 = vld [vmem:[#allocation5 + $0x118] sm:$0xff] }
0x1504   :  { %v3634_v44 = vpop.eup %3633  ;;  %v2246_v45 = vadd.f32 1.0, %v3632_v34  ;;  %v2591_v34 = vld [vmem:[#allocation5 + $0x38] sm:$0xff] }
0x1505   :  { %v2353_v48 = vadd.f32 1.0, %v3634_v44  ;;  %v3419_v44 = vpack.c.bf16 %v2586_v26, %v2584_v22  ;;  %3418 = vmatprep.subr.bf16.mxu0 %v3417_v15  ;;  %v3449_v15 = vpack.c.bf16 %v2619_v19, %v2617_v41  ;;  %v2616_v26 = vld [vmem:[#allocation5 + $0x100] sm:$0xff]  ;;  %v2645_v41 = vld [vmem:[#allocation5 + $0x1e8] sm:$0xff]  ;;  %v2647_v19 = vld [vmem:[#allocation5 + $0x1f8] sm:$0xff] }
0x1506   :  { %3635 = vrcp.f32 %v2246_v45  ;;  %v3421_v45 = vpack.c.bf16 %v2591_v34, %v2589_v42  ;;  %v2618_v42 = vld [vmem:[#allocation5 + $0x110] sm:$0xff]  ;;  %v2621_v34 = vld [vmem:[#allocation5 + $0x128] sm:$0xff] }
0x1507   :  { %3637 = vrcp.f32 %v2353_v48  ;;  %v2588_v48 = vld [vmem:[#allocation5 + $0x20] sm:$0xff] }
0x1510   :  { %v3636_v54 = vpop.eup %3635 }
0x1511   :  { %v3638_v52 = vpop.eup %3637  ;;  %v2250_v51 = vmul.f32 %v3636_v54, %v4484_v56 }
0x1512   :  { %v2357_v61 = vmul.f32 %v3638_v52, %v4493_v57 }
0x1572   :  { %v2253_v47 = vpop.permute.xlu1 %2252 }
0x1573   :  { %v2255_v49 = vmul.f32 %v3636_v54, %v2253_v47  ;;  %v2593_v47 = vld [vmem:[#allocation5 + $0x48] sm:$0xff] }
0x1575   :  { %v2360_v50 = vpop.permute.xlu0 %2359  ;;  %2257 = vrot.lane.b32.xlu1 %v2255_v49, %s3759_s22  ;;  %v3425_v49 = vpack.c.bf16 %v2595_v8, %v2593_v47  ;;  %v2622_v47 = vld [vmem:[#allocation5 + $0x130] sm:$0xff]  ;;  %v2625_v8 = vld [vmem:[#allocation5 + $0x148] sm:$0xff] }
0x1576   :  { %v2362_v46 = vmul.f32 %v3638_v52, %v2360_v50  ;;  %v2594_v50 = vld [vmem:[#allocation5 + $0x50] sm:$0xff] }
0x1578   :  { %2364 = vrot.lane.b32.xlu0 %v2362_v46, %s3759_s22  ;;  %v2597_v46 = vld [vmem:[#allocation5 + $0x68] sm:$0xff] }
0x1579   :  { %2271 = vperm.xlu1 %3511, %v3972_v63  }
0x15e7   :  { %v2258_v53 = vpop.permute.xlu1 %2257 }
0x15e8   :  { %v4487_v55 = vadd.f32 %v2258_v53, %v2250_v51  ;;  %v2599_v51 = vld [vmem:[#allocation5 + $0x78] sm:$0xff] }
0x15ea   :  { %3639 = vtanh.f32 %v4487_v55  ;;  %v2365_v63 = vpop.permute.xlu0 %2364 }
0x15eb   :  { %v4497_v1 = vadd.f32 %v2365_v63, %v2357_v61  ;;  %v3429_v61 = vpack.c.bf16 %v2599_v51, %v2597_v46  ;;  %v2596_v63 = vld [vmem:[#allocation5 + $0x60] sm:$0xff]  ;;  %v2626_v46 = vld [vmem:[#allocation5 + $0x150] sm:$0xff]  ;;  %v2629_v51 = vld [vmem:[#allocation5 + $0x168] sm:$0xff] }
0x15ed   :  { %3641 = vtanh.f32 %v4497_v1 }
0x15f4   :  { %v3640_v10 = vpop.eup %3639 }
0x15f5   :  { %2263 = vrot.lane.b32.xlu0 %v3640_v10, %s3758_s6  ;;  %v2598_v10 = vld [vmem:[#allocation5 + $0x70] sm:$0xff] }
0x15f7   :  { %v3642_v60 = vpop.eup %3641 }
0x15f8   :  { %2370 = vrot.lane.b32.xlu1 %v3642_v60, %s3758_s6  ;;  %v4502_v24 = vpop.permute.xlu1 %2271  ;;  %v2601_v60 = vld [vmem:[#allocation5 + $0x88] sm:$0xff] }
0x15f9   :  { %vm2273_vm0 = vcmp.eq.s32.totalorder %v4502_v24, 1 }
0x1667   :  { %v2264_v43 = vpop.permute.xlu0 %2263 }
0x1668   :  { %v2266_v5 = vmul.f32 %v3636_v54, %v2264_v43  ;;  %v2590_v54 = vld [vmem:[#allocation5 + $0x30] sm:$0xff]  ;;  %v2603_v43 = vld [vmem:[#allocation5 + $0x98] sm:$0xff] }
0x1669   :  { %v3423_v27 = vpack.c.bf16 %v2590_v54, %v2588_v48  ;;  %v2620_v54 = vld [vmem:[#allocation5 + $0x120] sm:$0xff] }
0x166a   :  { %v2269_v11 = vsel %vm1988_vm3, %v2266_v5, 0.0  ;;  %v2371_v29 = vpop.permute.xlu1 %2370  ;;  %v4512_v59 = vsel %vm1988_vm3, %v2266_v5, %v4437_v32  ;;  %v3431_v5 = vpack.c.bf16 %v2598_v10, %v2596_v63  ;;  %v2628_v10 = vld [vmem:[#allocation5 + $0x160] sm:$0xff] }
0x166b   :  { %v3517_v6 = vpack.i.bf16 %v1129_v28, %v2269_v11  ;;  %v4514_v13 = vmul.f32 %v3638_v52, %v2371_v29  ;;  %2378 = vrot.lane.b32.xlu0 %v4512_v59, %s3759_s22  ;;  %v2592_v52 = vld [vmem:[#allocation5 + $0x40] sm:$0xff]  ;;  %v3433_v28 = vpack.c.bf16 %v2603_v43, %v2601_v60  ;;  %v2602_v29 = vld [vmem:[#allocation5 + $0x90] sm:$0xff]  ;;  %v2633_v43 = vld [vmem:[#allocation5 + $0x188] sm:$0xff] }
0x166c   :  { %v3427_v53 = vpack.c.bf16 %v2594_v50, %v2592_v52  ;;  %v2600_v11 = vld [vmem:[#allocation5 + $0x80] sm:$0xff]  ;;  %v2630_v60 = vld [vmem:[#allocation5 + $0x170] sm:$0xff] }
0x166d   :  { %v2374_v0 = vsel %vm2273_vm0, %v4514_v13, 0.0  ;;  %v2624_v50 = vld [vmem:[#allocation5 + $0x140] sm:$0xff] }
0x166e   :  { %2453 = vrot.lane.b32.xlu1 %v2374_v0, %s3759_s22  ;;  %v2607_v0 = vld [vmem:[#allocation5 + $0xb8] sm:$0xff] }
0x16dd   :  { %v2379_v62 = vpop.permute.xlu0 %2378 }
0x16de   :  { %3252 = vmatmul.mubr.msk.f32.vlgmr.msra.gmra.mrb[16].mxu0 %vm150_vm1, %v2379_v62  ;;  %v3435_v62 = vpack.c.bf16 %v2602_v29, %v2600_v11  ;;  %v2632_v29 = vld [vmem:[#allocation5 + $0x180] sm:$0xff] }
0x16df   :  { %3420 = vmatpush1.bf16.msra.mxu0 %v3419_v44  ;;  %v2623_v44 = vld [vmem:[#allocation5 + $0x138] sm:$0xff] }
0x16e0   :  { %v2454_v58 = vpop.permute.xlu1 %2453  ;;  %3422 = vmatprep.subr.bf16.mxu0 %v3421_v45  ;;  %v3451_v45 = vpack.c.bf16 %v2618_v42, %v2616_v26  ;;  %v3453_v48 = vpack.c.bf16 %v2623_v44, %v2621_v34  ;;  %v2646_v26 = vld [vmem:[#allocation5 + $0x1f0] sm:$0xff]  ;;  %v2376_v42 = vsel %vm2273_vm0, %v4497_v1, %v4493_v57 }
0x16e1   :  { %3263 = vmatmul.mubr.msk.f32.vlgmr.msra.gmra.mrb[36].mxu1 %vm150_vm1, %v2454_v58 }
0x16e3   :  { %3424 = vmatpush1.bf16.msra.mxu0 %v3423_v27  ;;  %v2627_v27 = vld [vmem:[#allocation5 + $0x158] sm:$0xff] }
0x16e4   :  { %3426 = vmatprep.subr.bf16.mxu0 %v3425_v49  ;;  %v3455_v49 = vpack.c.bf16 %v2622_v47, %v2620_v54  ;;  %v3457_v52 = vpack.c.bf16 %v2627_v27, %v2625_v8 }
0x16e7   :  { %3428 = vmatpush1.bf16.msra.mxu0 %v3427_v53  ;;  %v2631_v53 = vld [vmem:[#allocation5 + $0x178] sm:$0xff] }
0x16e8   :  { %3430 = vmatprep.subr.bf16.mxu0 %v3429_v61  ;;  %v3459_v61 = vpack.c.bf16 %v2626_v46, %v2624_v50  ;;  %v3461_v63 = vpack.c.bf16 %v2631_v53, %v2629_v51 }
0x16eb   :  { %3432 = vmatpush1.bf16.msra.mxu0 %v3431_v5  ;;  %v2635_v5 = vld [vmem:[#allocation5 + $0x198] sm:$0xff] }
0x16ec   :  { %3434 = vmatprep.subr.bf16.mxu0 %v3433_v28  ;;  %v3463_v28 = vpack.c.bf16 %v2630_v60, %v2628_v10  ;;  %v3465_v11 = vpack.c.bf16 %v2635_v5, %v2633_v43 }
0x16ef   :  { %3436 = vmatpush1.bf16.msra.mxu0 %v3435_v62  ;;  %v2639_v62 = vld [vmem:[#allocation5 + $0x1b8] sm:$0xff] }
0x17b1   :  { %v2448_v18 = vpop.f32.mrb[16].mxu0 }
0x17b2   :  { %v3253_v32 = vpop.f32.mrb[17].mxu0 }
0x17b3   :  { %v2606_v32 = vld [vmem:[#allocation5 + $0xb0] sm:$0xff] }
0x17b4   :  { %v2523_v35 = vpop.f32.mrb[36].mxu1 }
0x17b5   :  { %v2524_v9 = vadd.f32 %v2523_v35, %v2448_v18  ;;  %v3264_v17 = vpop.f32.mrb[37].mxu1  ;;  %v2604_v18 = vld [vmem:[#allocation5 + $0xa0] sm:$0xff]  ;;  %v2609_v35 = vld [vmem:[#allocation5 + $0xc8] sm:$0xff] }
0x17b6   :  { %v3439_v17 = vpack.c.bf16 %v2606_v32, %v2604_v18  ;;  %v2636_v32 = vld [vmem:[#allocation5 + $0x1a0] sm:$0xff] }
0x17b7   :  { %v2527_v16 = vadd.f32 %v3651_v36, %v2524_v9  ;;  %v2611_v9 = vld [vmem:[#allocation5 + $0xd8] sm:$0xff] }
0x17b8   :  { %v3441_v36 = vpack.c.bf16 %v2611_v9, %v2609_v35  ;;  %v2638_v35 = vld [vmem:[#allocation5 + $0x1b0] sm:$0xff] }
0x17b9   :  { %3643 = vtanh.f32 %v2527_v16  ;;  %v2848_v21 = vmul.f32 -1.442695, %v2527_v16  ;;  %v2608_v16 = vld [vmem:[#allocation5 + $0xc0] sm:$0xff]  ;;  %v3471_v9 = vpack.c.bf16 %v2638_v35, %v2636_v32 }
0x17bb   :  { %3645 = vpow2.f32 %v2848_v21  ;;  %v2613_v21 = vld [vmem:[#allocation5 + $0xe8] sm:$0xff] }
0x17c3   :  { %v3644_v12 = vpop.eup %3643 }
0x17c4   :  { %2537 = vrot.lane.b32.xlu0 %v3644_v12, %s3758_s6  ;;  %v2610_v12 = vld [vmem:[#allocation5 + $0xd0] sm:$0xff] }
0x17c5   :  { %v3646_v30 = vpop.eup %3645 }
0x17c6   :  { %v2531_v37 = vadd.f32 1.0, %v3646_v30  ;;  %v2615_v30 = vld [vmem:[#allocation5 + $0xf8] sm:$0xff] }
0x17c8   :  { %3647 = vrcp.f32 %v2531_v37  ;;  %v3443_v37 = vpack.c.bf16 %v2610_v12, %v2608_v16  ;;  %v2641_v12 = vld [vmem:[#allocation5 + $0x1c8] sm:$0xff] }
0x17d2   :  { %v4529_v38 = vpop.eup %3647 }
0x1836   :  { %v2538_v39 = vpop.permute.xlu0 %2537 }
0x1837   :  { %v2540_v40 = vmul.f32 %v4529_v38, %v2538_v39  ;;  %v3445_v39 = vpack.c.bf16 %v2615_v30, %v2613_v21  ;;  %v2643_v21 = vld [vmem:[#allocation5 + $0x1d8] sm:$0xff] }
0x1839   :  { %2542 = vrot.lane.b32.xlu1 %v2540_v40, %s3759_s22  ;;  %v2612_v40 = vld [vmem:[#allocation5 + $0xe0] sm:$0xff] }
0x183d   :  { %2565 = vrot.lane.b32.xlu1 %v1699_v14, %s3759_s22  ;;  %v2614_v14 = vld [vmem:[#allocation5 + $0xf0] sm:$0xff] }
0x183e   :  { %v3447_v22 = vpack.c.bf16 %v2614_v14, %v2612_v40  ;;  %v2642_v40 = vld [vmem:[#allocation5 + $0x1d0] sm:$0xff] }
0x1841   :  { %3518 = vrot.lane.b32.xlu1 %v3517_v6, %s3767_s7  ;;  %v2605_v6 = vld [vmem:[#allocation5 + $0xa8] sm:$0xff] }
0x1842   :  { %v3437_v58 = vpack.c.bf16 %v2607_v0, %v2605_v6  ;;  %v2634_v6 = vld [vmem:[#allocation5 + $0x190] sm:$0xff]  ;;  %v2637_v0 = vld [vmem:[#allocation5 + $0x1a8] sm:$0xff] }
0x1843   :  { %v3469_v18 = vpack.c.bf16 %v2639_v62, %v2637_v0 }
0x1844   :  { %3438 = vmatprep.subr.bf16.mxu0 %v3437_v58  ;;  %v3467_v58 = vpack.c.bf16 %v2634_v6, %v2632_v29 }
0x1845   :  { %3440 = vmatpush1.bf16.msra.mxu0 %v3439_v17  ;;  %v2268_v17 = vsel %vm1988_vm3, %v4487_v55, %v4484_v56  ;;  %v2375_v55 = vsel %vm2273_vm0, %v4514_v13, %v4449_v7 }
0x1846   :  { %3442 = vmatprep.subr.bf16.mxu0 %v3441_v36  ;;  %v2535_v36 = vmul.f32 %v4529_v38, %v2268_v17 }
0x1849   :  { %3444 = vmatpush1.bf16.msra.mxu0 %v3443_v37  ;;  %v3473_v37 = vpack.c.bf16 %v2643_v21, %v2641_v12 }
0x184a   :  { %3446 = vmatprep.subr.bf16.mxu0 %v3445_v39  ;;  %v2640_v39 = vld [vmem:[#allocation5 + $0x1c0] sm:$0xff] }
0x184b   :  { %v3475_v14 = vpack.c.bf16 %v2642_v40, %v2640_v39 }
0x184d   :  { %3448 = vmatpush1.bf16.msra.mxu0 %v3447_v22  ;;  %v3477_v22 = vpack.c.bf16 %v2647_v19, %v2645_v41 }
0x184e   :  { %3450 = vmatprep.subr.bf16.mxu0 %v3449_v15  ;;  %v2644_v15 = vld [vmem:[#allocation5 + $0x1e0] sm:$0xff] }
0x184f   :  { %v3479_v20 = vpack.c.bf16 %v2646_v26, %v2644_v15 }
0x1851   :  { %3452 = vmatpush1.bf16.msra.mxu0 %v3451_v45 }
0x1852   :  { %3454 = vmatprep.subr.bf16.mxu0 %v3453_v48 }
0x1855   :  { %3456 = vmatpush1.bf16.msra.mxu0 %v3455_v49 }
0x1856   :  { %3458 = vmatprep.subr.bf16.mxu0 %v3457_v52 }
0x1859   :  { %3460 = vmatpush1.bf16.msra.mxu0 %v3459_v61 }
0x185a   :  { %3462 = vmatprep.subr.bf16.mxu0 %v3461_v63 }
0x185d   :  { %3464 = vmatpush1.bf16.msra.mxu0 %v3463_v28 }
0x185e   :  { %3466 = vmatprep.subr.bf16.mxu0 %v3465_v11 }
0x1861   :  { %3468 = vmatpush1.bf16.msra.mxu0 %v3467_v58 }
0x1862   :  { %3470 = vmatprep.subr.bf16.mxu0 %v3469_v18 }
0x1865   :  { %3472 = vmatpush1.bf16.msra.mxu0 %v3471_v9 }
0x1866   :  { %3474 = vmatprep.subr.bf16.mxu0 %v3473_v37 }
0x1869   :  { %3476 = vmatpush1.bf16.msra.mxu0 %v3475_v14 }
0x186a   :  { %3478 = vmatprep.subr.bf16.mxu0 %v3477_v22 }
0x186d   :  { %3480 = vmatpush1.bf16.msra.mxu0 %v3479_v20 }
0x18ab   :  { %v2543_v16 = vpop.permute.xlu1 %2542 }
0x18ac   :  { %v2545_v30 = vadd.f32 %v2543_v16, %v2535_v36 }
0x18ae   :  { %3649 = vtanh.f32 %v2545_v30  ;;  %v2553_v1 = vsel %vm2273_vm0, %v2545_v30, %v2268_v17 }
0x18af   :  { %v2566_v34 = vpop.permute.xlu1 %2565 }
0x18b3   :  { %v3519_v3 = vpop.permute.xlu1 %3518 }
0x18b4   :  { %v3521_v48 = vunpack.i.h.bf16 %v3519_v3  ;;  %v3520_v54 = vunpack.i.l.bf16 %v3519_v3 }
0x18b8   :  { %v3650_v56 = vpop.eup %3649 }
0x18b9   :  { %2548 = vrot.lane.b32.xlu0 %v3650_v56, %s3758_s6 }
0x18bd   :  { %3513 = vrot.lane.b32.xlu0 %v3512_v33, %s3758_s6 }
0x18c1   :  { %2734 = vrot.lane.b32.xlu0 %v2375_v55, %s3759_s22 }
0x18c5   :  { %2745 = vrot.lane.b32.xlu0 %v2376_v42, %s3767_s7 }
0x192b   :  { %v2549_v44 = vpop.permute.xlu0 %2548 }
0x192c   :  { %v2551_v45 = vmul.f32 %v4529_v38, %v2549_v44 }
0x192e   :  { %v2552_v31 = vsel %vm2273_vm0, %v2551_v45, %v4512_v59  ;;  %v1414_v59 = vsel %vm1133_vm14, %v4279_v2, 0.0  ;;  %v2554_v47 = vsel %vm2273_vm0, %v2551_v45, 0.0 }
0x192f   :  { %2739 = vrot.lane.b32.xlu1 %v2552_v31, %s3759_s22  ;;  %v3514_v33 = vpop.permute.xlu0 %3513 }
0x1930   :  { %v3516_v7 = vunpack.i.h.bf16 %v3514_v33  ;;  %v3515_v13 = vunpack.i.l.bf16 %v3514_v33 }
0x1932   :  { %v2576_v57 = vsel %vm150_vm1, %v4079_v25, %v3516_v7  ;;  %v2581_v38 = vsel %vm150_vm1, %v2566_v34, %v3515_v13 }
0x1933   :  { %2750 = vrot.lane.b32.xlu1 %v2553_v1, %s3767_s7  ;;  %v2735_v8 = vpop.permute.xlu0 %2734  ;;  %v2582_v27 = vsel %vm2577_vm4, %v2581_v38, %v3520_v54  ;;  %v2578_v49 = vsel %vm2577_vm4, %v2576_v57, %v3521_v48 }
0x1934   :  { %2737 = vst.msk [vmem:[#allocation7] sm:$0xff] %vm150_vm1, %v2735_v8  ;;  %v2583_v25 = vsel %vm2579_vm5, %v2582_v27, %v2554_v47  ;;  %v2580_v52 = vsel %vm2579_vm5, %v2578_v49, %v1414_v59 }
0x1935   :  { %2724 = vmatprep.mubr.f32.mxu0 %v2583_v25 }
0x1936   :  { %2725 = vmatmul.mubr.f32.vlgmr.msra.gmra.mrb[18].mxu0 %v2580_v52 }
0x1937   :  { %v2746_v50 = vpop.permute.xlu0 %2745 }
0x1938   :  { %2748 = vst.msk [vmem:[#allocation8] sm:$0xff] %vm150_vm1, %v2746_v50 }
0x19a1   :  { %v2740_v4 = vpop.permute.xlu1 %2739 }
0x19a2   :  { %2743 = vst.msk [vmem:[#allocation7 + $0x8] sm:$0xff] %vm150_vm1, %v2740_v4 }
0x19a3   :  { %3707 = shalt.err (!%p3704_p6)
}
0x19a4   :  { %s3708_s4 = scalar_lea.hbm %s4629_s11, 256 }
0x19a5   :  { %p3709_p7 = scmp.ne.s32.totalorder %s4629_s11, %s3708_s4  ;;  %p3712_p8 = scmp.lt.u32.totalorder %s3708_s4, %s4629_s11 }
0x19a7   :  { %p3714_p9 = pnand %p3712_p8, %p3709_p7 }
0x19a9   :  { %3717 = shalt.err (!%p3714_p9)
}
0x19aa   :  { %2768 = dma.vmem_to_hbm [thread:$0]  %s2763_s21, 256, %s4629_s11, [#allocation4], %s3749_s13, %s3749_s13, %s3750_s14   ;;  %v2751_v2 = vpop.permute.xlu1 %2750 }
0x19ab   :  { %2754 = vst.msk [vmem:[#allocation8 + $0x8] sm:$0xff] %vm150_vm1, %v2751_v2  ;;  %s3718_s29 = scalar_lea.vmem %s2775_s24, 256  ;;  %p3723_p11 = scmp.lt.s32.totalorder %s2775_s24, %s2775_s24 }
0x19ac   :  { %p3719_p10 = scmp.ne.s32.totalorder %s2775_s24, %s3718_s29  ;;  %p3724_p12 = scmp.lt.s32.totalorder %s3718_s29, %s3718_s29 }
0x19ae   :  { %p3725_p13 = por %p3724_p12, %p3723_p11 }
0x19b0   :  { %p3726_p0 = pnand %p3725_p13, %p3719_p10 }
0x19b2   :  { %3729 = shalt.err (!%p3726_p0)
}
0x19b3   :  { %s3730_s16 = scalar_lea.hbm %s4630_s12, 256 }
0x19b4   :  { %p3731_p1 = scmp.ne.s32.totalorder %s4630_s12, %s3730_s16  ;;  %p3734_p2 = scmp.lt.u32.totalorder %s3730_s16, %s4630_s12 }
0x19b6   :  { %p3736_p3 = pnand %p3734_p2, %p3731_p1 }
0x19b8   :  { %3739 = shalt.err (!%p3736_p3)
}
0x19b9   :  { %2780 = dma.vmem_to_hbm [thread:$0]  %s2775_s24, 256, %s4630_s12, [#allocation9], %s3749_s13, %s3749_s13, %s3750_s14   ;;  %v2651_v24 = vshrl.u32 %v89_v23, 7 }
0x19ba   :  { %v2648_v51 = vld [vmem:[%s4627_s9] sm:$0x3] }
0x19bb   :  { %v2652_v46 = vsub.s32 0, %v2651_v24  ;;  %v2656_v53 = vsub.s32 1, %v2651_v24 }
0x19bd   :  { %v2653_v61 = vrot.slane %v2648_v51, %v2652_v46  ;;  %v2657_v63 = vrot.slane %v2648_v51, %v2656_v53 }
0x1a09   :  { %v2726_v10 = vpop.f32.mrb[18].mxu0 }
0x1a0a   :  { %v2727_v60 = vadd.f32 %v2726_v10, %v2653_v61  ;;  %v2728_v43 = vpop.f32.mrb[19].mxu0 }
0x1a0b   :  { %v2729_v5 = vadd.f32 %v2728_v43, %v2657_v63 }
0x1a0c   :  { %2731 = vst [vmem:[%s4628_s10] sm:$0xff] %v2727_v60 }
0x1a0d   :  { %2732 = vst [vmem:[%s4628_s10 + $0x8] sm:$0xff] %v2729_v5 }
0x1a0e   :  { %3744 = dma.done.wait [#allocation4], 256  }
0x1a0f   :  { %3745 = vsyncadd [#allocation4], 4294967040 }
0x1a10   :  { %3746 = dma.done.wait [#allocation9], 256  }
0x1a11   :  { %3747 = vsyncadd [#allocation9], 4294967040 }
0x1a12   :  { %2789 = vsyncpa [#allocation3], 1 }
0x1a13   :  { %2790 = vsyncpa [#allocation6], 1 }
0x1a14   :  { %2791 = vsyncpa [#allocation4], 1 }
0x1a15   :  { %2792 = vsyncpa [#allocation9], 1 }

</bundles_post_ra>
